<compile_context>
chip_gen: v5e
topology: v5e:2x2
jax: 0.10.0
libtpu: 0.0.40
codegen_flags: <defaults>
</compile_context>

<pallas_src>
import jax
import jax.numpy as jnp
from jax.experimental import pallas as pl
from jax.experimental.pallas import tpu as pltpu


_NEG_PAD = -1e30          # pad bias for fake logit lanes (exp -> exactly 0)
_OUT_PAD = 128            # 10 classes padded up to one full lane group
_IN_FEATURES = 784


def _round_up(n, m):
    return ((n + m - 1) // m) * m


# ----------------------------- Pallas kernel ------------------------------ #
def _srelu(x, s):
    """S-shaped ReLU with pre-folded affine constants.

    s is an (8, F) f32 pack: rows = [t_l, a_l, c_l, t_r, a_r, c_r, 0, 0]
    where c_l = t_l*(1 - a_l), c_r = t_r*(1 - a_r), so each branch is a*x + c.
    """
    t_l = s[0:1, :]
    a_l = s[1:2, :]
    c_l = s[2:3, :]
    t_r = s[3:4, :]
    a_r = s[4:5, :]
    c_r = s[5:6, :]
    return jnp.where(x >= t_r, a_r * x + c_r,
                     jnp.where(x <= t_l, a_l * x + c_l, x))


def mlp_kernel(x_ref,
               w1_ref, b1_ref, s1_ref,
               w2_ref, b2_ref, s2_ref,
               w3_ref, b3_ref, s3_ref,
               w4_ref, b4_ref,
               out_ref):
    # x arrives as (bt, 784) f32 straight from HBM; cast to bf16 in-kernel so
    # no separate XLA pad/cast pass touches the (only) large tensor.
    x = x_ref[...].astype(jnp.bfloat16)

    h = jnp.dot(x, w1_ref[...], preferred_element_type=jnp.float32) + b1_ref[...]
    h = _srelu(h, s1_ref[...])

    h = jnp.dot(h.astype(jnp.bfloat16), w2_ref[...],
                preferred_element_type=jnp.float32) + b2_ref[...]
    h = _srelu(h, s2_ref[...])

    h = jnp.dot(h.astype(jnp.bfloat16), w3_ref[...],
                preferred_element_type=jnp.float32) + b3_ref[...]
    h = _srelu(h, s3_ref[...])

    # b4 is padded with -1e30 beyond column 10, so the padded lanes never win
    # the max and contribute exp(...) == 0 to the softmax denominator.
    logits = jnp.dot(h.astype(jnp.bfloat16), w4_ref[...],
                     preferred_element_type=jnp.float32) + b4_ref[...]

    # log_softmax along the feature axis (dim=1 in the PyTorch module), f32.
    m = jnp.max(logits, axis=-1, keepdims=True)
    z = logits - m
    lse = jnp.log(jnp.sum(jnp.exp(z), axis=-1, keepdims=True))
    out_ref[...] = (z - lse).astype(out_ref.dtype)


# --------------------- param preparation for the kernel -------------------- #
def _pack_srelu(s4):
    """(4, F) [t_l, a_l, t_r, a_r] -> (8, F) [t_l, a_l, c_l, t_r, a_r, c_r, 0, 0]."""
    t_l, a_l, t_r, a_r = s4[0:1], s4[1:2], s4[2:3], s4[3:4]
    c_l = t_l * (1.0 - a_l)
    c_r = t_r * (1.0 - a_r)
    z = jnp.zeros_like(t_l)
    return jnp.concatenate([t_l, a_l, c_l, t_r, a_r, c_r, z, z], axis=0)


def prepare_kernel_params(params):
    (w1, b1, s1), (w2, b2, s2), (w3, b3, s3), (w4, b4) = params

    # pad the classifier head 10 -> 128 lanes; bias pad = -1e30 kills fake lanes
    w4p = jnp.zeros((w4.shape[0], _OUT_PAD), jnp.float32).at[:, :w4.shape[1]].set(w4)
    b4p = jnp.full((1, _OUT_PAD), _NEG_PAD, jnp.float32).at[:, :b4.shape[1]].set(b4)

    bf16 = lambda w: w.astype(jnp.bfloat16)
    return (bf16(w1),  b1, _pack_srelu(s1),
            bf16(w2),  b2, _pack_srelu(s2),
            bf16(w3),  b3, _pack_srelu(s3),
            bf16(w4p), b4p)


# ------------------------------ wrapper ----------------------------------- #
def _choose_batch_tile(B, batch_tile):
    """Tile rounded to 16 (bf16 sublane pack), >=2 grid steps when B allows
    (v7x megacore), >=128 rows once B >= 256 so the MXU M-dim stays filled."""
    bt = min(batch_tile, _round_up(pl.cdiv(B, 4), 16))
    if B >= 256:
        bt = max(bt, 128)
    return max(bt, 16)


def classifier_forward(x, params, *, batch_tile=1024):
    """x: (B, 1, 28, 28) float32, NCHW. Returns (B, 10) log-probabilities."""
    B = x.shape[0]
    x2d = x.reshape(B, -1).astype(jnp.float32)
    K = x2d.shape[1]
    assert K == _IN_FEATURES

    bt = _choose_batch_tile(B, batch_tile)
    Bp = _round_up(B, bt)
    if Bp != B:
        # only the (< bt) remainder rows get padded; no full-array copy/cast
        x2d = jnp.concatenate(
            [x2d, jnp.zeros((Bp - B, K), x2d.dtype)], axis=0)

    kparams = prepare_kernel_params(params)
    grid = (Bp // bt,)

    def row_tile(shape):
        return pl.BlockSpec(shape, lambda i: (i, 0))

    def resident(a):
        # parameters: constant index_map -> VMEM-resident, single buffer
        return pl.BlockSpec(a.shape, lambda i: (0, 0),
                            pipeline_mode=pl.Buffered(1))

    in_specs = [row_tile((bt, K))] + [resident(p) for p in kparams]
    out_spec = row_tile((bt, _OUT_PAD))

    flops = 2 * Bp * (K * 256 + 256 * 128 + 128 * 64 + 64 * _OUT_PAD)
    bytes_accessed = (int(x2d.size) * 4
                      + sum(int(a.size) * a.dtype.itemsize for a in kparams)
                      + Bp * _OUT_PAD * 4)
    cost = pl.CostEstimate(flops=flops,
                           transcendentals=Bp * (_OUT_PAD + 1),
                           bytes_accessed=bytes_accessed)

    out = pl.pallas_call(
        mlp_kernel,
        out_shape=jax.ShapeDtypeStruct((Bp, _OUT_PAD), jnp.float32),
        grid=grid,
        in_specs=in_specs,
        out_specs=out_spec,
        compiler_params=pltpu.CompilerParams(
            dimension_semantics=("parallel",),
            vmem_limit_bytes=48 << 20),
        cost_estimate=cost,
    )(x2d, *kparams)

    return out[:B, :10]


# --------------------------- parameter setup ------------------------------ #
def _linear_init(key, fan_in, fan_out):
    """Deterministic PyTorch-style uniform(-1/sqrt(fan_in), 1/sqrt(fan_in))."""
    kw, kb = jax.random.split(key)
    bound = 1.0 / jnp.sqrt(jnp.float32(fan_in))
    w = jax.random.uniform(kw, (fan_in, fan_out), jnp.float32, -bound, bound)
    b = jax.random.uniform(kb, (1, fan_out), jnp.float32, -bound, bound)
    return w, b


def _srelu_init(nfeat):
    """Deterministic per-channel SReLU params, packed as (4, F):
       rows = [t_left, a_left, t_right, a_right]."""
    ramp = jnp.linspace(0.0, 1.0, nfeat, dtype=jnp.float32)[None, :]
    t_l = -1.0 + 0.2 * ramp
    a_l = 0.05 + 0.1 * ramp
    t_r = 0.8 + 0.4 * ramp
    a_r = 0.3 + 0.5 * ramp
    return jnp.concatenate([t_l, a_l, t_r, a_r], axis=0)  # (4, F)


def make_params(key):
    k1, k2, k3, k4 = jax.random.split(key, 4)
    w1, b1 = _linear_init(k1, 784, 256)
    w2, b2 = _linear_init(k2, 256, 128)
    w3, b3 = _linear_init(k3, 128, 64)
    w4, b4 = _linear_init(k4, 64, 10)
    return ((w1, b1, _srelu_init(256)),
            (w2, b2, _srelu_init(128)),
            (w3, b3, _srelu_init(64)),
            (w4, b4))


# ------------------------- pure-JAX reference ------------------------------ #
def classifier_ref(x, params):
    (w1, b1, s1), (w2, b2, s2), (w3, b3, s3), (w4, b4) = params
    h = x.reshape(x.shape[0], -1)

    def srelu(v, s):
        t_l, a_l, t_r, a_r = s[0:1], s[1:2], s[2:3], s[3:4]
        return jnp.where(v >= t_r, t_r + a_r * (v - t_r),
                         jnp.where(v <= t_l, t_l + a_l * (v - t_l), v))

    h = srelu(h @ w1 + b1, s1)
    h = srelu(h @ w2 + b2, s2)
    h = srelu(h @ w3 + b3, s3)
    logits = h @ w4 + b4
    return jax.nn.log_softmax(logits, axis=1)


if __name__ == "__main__":
    key = jax.random.PRNGKey(0)
    kx, kp = jax.random.split(key)
    params = make_params(kp)

    # small smoke run (single grid step)
    B = 16
    x = jax.random.normal(kx, (B, 1, 28, 28), dtype=jnp.float32)  # NCHW
    out = jax.block_until_ready(classifier_forward(x, params))
    ref = classifier_ref(x, params)
    assert out.shape == (B, 10)
    # bf16 weights/activations in the kernel -> loosened tolerance vs f32 reference
    assert jnp.allclose(out, ref, atol=5e-2, rtol=5e-2), "mismatch vs reference (B=16)"

    # exercise the multi-step tiled path (bt=16 -> grid length 4)
    B2 = 64
    x2 = jax.random.normal(jax.random.PRNGKey(1), (B2, 1, 28, 28), dtype=jnp.float32)
    out2 = jax.block_until_ready(classifier_forward(x2, params))
    ref2 = classifier_ref(x2, params)
    assert out2.shape == (B2, 10)
    assert jnp.allclose(out2, ref2, atol=5e-2, rtol=5e-2), "mismatch vs reference (B=64)"

    print("KERNEL_OK")
</pallas_src>

<mosaic_0001>
module attributes {stable_mosaic.version = 11 : i64} {
  func.func @mlp_kernel(%arg0: i32, %arg1: memref<16x784xf32, #tpu.memory_space<vmem>>, %arg2: memref<784x256xbf16, #tpu.memory_space<vmem>>, %arg3: memref<1x256xf32, #tpu.memory_space<vmem>>, %arg4: memref<8x256xf32, #tpu.memory_space<vmem>>, %arg5: memref<256x128xbf16, #tpu.memory_space<vmem>>, %arg6: memref<1x128xf32, #tpu.memory_space<vmem>>, %arg7: memref<8x128xf32, #tpu.memory_space<vmem>>, %arg8: memref<128x64xbf16, #tpu.memory_space<vmem>>, %arg9: memref<1x64xf32, #tpu.memory_space<vmem>>, %arg10: memref<8x64xf32, #tpu.memory_space<vmem>>, %arg11: memref<64x128xbf16, #tpu.memory_space<vmem>>, %arg12: memref<1x128xf32, #tpu.memory_space<vmem>>, %arg13: memref<16x128xf32, #tpu.memory_space<vmem>>) attributes {dimension_semantics = [#tpu.dimension_semantics<parallel>], iteration_bounds = array<i64: 1>, scalar_prefetch = 0 : i64, scratch_operands = 0 : i64, tpu.core_type = #tpu.core_type<tc>, window_params = [{transform_indices = @transform_0, window_bounds = array<i64: 16, 784>}, {pipeline_mode = #tpu.pipeline_mode<synchronous>, transform_indices = @transform_1, window_bounds = array<i64: 784, 256>}, {pipeline_mode = #tpu.pipeline_mode<synchronous>, transform_indices = @transform_2, window_bounds = array<i64: 1, 256>}, {pipeline_mode = #tpu.pipeline_mode<synchronous>, transform_indices = @transform_3, window_bounds = array<i64: 8, 256>}, {pipeline_mode = #tpu.pipeline_mode<synchronous>, transform_indices = @transform_4, window_bounds = array<i64: 256, 128>}, {pipeline_mode = #tpu.pipeline_mode<synchronous>, transform_indices = @transform_5, window_bounds = array<i64: 1, 128>}, {pipeline_mode = #tpu.pipeline_mode<synchronous>, transform_indices = @transform_6, window_bounds = array<i64: 8, 128>}, {pipeline_mode = #tpu.pipeline_mode<synchronous>, transform_indices = @transform_7, window_bounds = array<i64: 128, 64>}, {pipeline_mode = #tpu.pipeline_mode<synchronous>, transform_indices = @transform_8, window_bounds = array<i64: 1, 64>}, {pipeline_mode = #tpu.pipeline_mode<synchronous>, transform_indices = @transform_9, window_bounds = array<i64: 8, 64>}, {pipeline_mode = #tpu.pipeline_mode<synchronous>, transform_indices = @transform_10, window_bounds = array<i64: 64, 128>}, {pipeline_mode = #tpu.pipeline_mode<synchronous>, transform_indices = @transform_11, window_bounds = array<i64: 1, 128>}, {transform_indices = @transform_12, window_bounds = array<i64: 16, 128>}]} {
    %c0 = arith.constant 0 : index
    %c0_0 = arith.constant 0 : index
    %0 = vector.load %arg1[%c0, %c0_0] : memref<16x784xf32, #tpu.memory_space<vmem>>, vector<16x784xf32>
    %1 = arith.truncf %0 : vector<16x784xf32> to vector<16x784xbf16>
    %c0_1 = arith.constant 0 : index
    %c0_2 = arith.constant 0 : index
    %2 = vector.load %arg2[%c0_1, %c0_2] : memref<784x256xbf16, #tpu.memory_space<vmem>>, vector<784x256xbf16>
    %cst = arith.constant dense<0.000000e+00> : vector<16x256xf32>
    %3 = tpu.matmul %1, %2, %cst {dimension_numbers = #tpu.dot_dimension_numbers<[1], [0], [0], [1], [0, 0, 1, 1], [], []>} : vector<16x784xbf16>, vector<784x256xbf16>, vector<16x256xf32> -> vector<16x256xf32>
    %c0_3 = arith.constant 0 : index
    %c0_4 = arith.constant 0 : index
    %4 = vector.load %arg3[%c0_3, %c0_4] : memref<1x256xf32, #tpu.memory_space<vmem>>, vector<1x256xf32>
    %5 = vector.broadcast %4 : vector<1x256xf32> to vector<16x256xf32>
    %6 = arith.addf %3, %5 : vector<16x256xf32>
    %c0_5 = arith.constant 0 : index
    %c0_6 = arith.constant 0 : index
    %7 = vector.load %arg4[%c0_5, %c0_6] : memref<8x256xf32, #tpu.memory_space<vmem>>, vector<8x256xf32>
    %8 = vector.extract_strided_slice %7 {offsets = [0, 0], sizes = [1, 256], strides = [1, 1]} : vector<8x256xf32> to vector<1x256xf32>
    %9 = vector.extract_strided_slice %7 {offsets = [1, 0], sizes = [1, 256], strides = [1, 1]} : vector<8x256xf32> to vector<1x256xf32>
    %10 = vector.extract_strided_slice %7 {offsets = [2, 0], sizes = [1, 256], strides = [1, 1]} : vector<8x256xf32> to vector<1x256xf32>
    %11 = vector.extract_strided_slice %7 {offsets = [3, 0], sizes = [1, 256], strides = [1, 1]} : vector<8x256xf32> to vector<1x256xf32>
    %12 = vector.extract_strided_slice %7 {offsets = [4, 0], sizes = [1, 256], strides = [1, 1]} : vector<8x256xf32> to vector<1x256xf32>
    %13 = vector.extract_strided_slice %7 {offsets = [5, 0], sizes = [1, 256], strides = [1, 1]} : vector<8x256xf32> to vector<1x256xf32>
    %14 = vector.broadcast %11 : vector<1x256xf32> to vector<16x256xf32>
    %15 = arith.cmpf oge, %6, %14 : vector<16x256xf32>
    %16 = vector.broadcast %12 : vector<1x256xf32> to vector<16x256xf32>
    %17 = arith.mulf %16, %6 : vector<16x256xf32>
    %18 = vector.broadcast %13 : vector<1x256xf32> to vector<16x256xf32>
    %19 = arith.addf %17, %18 : vector<16x256xf32>
    %20 = vector.broadcast %8 : vector<1x256xf32> to vector<16x256xf32>
    %21 = arith.cmpf ole, %6, %20 : vector<16x256xf32>
    %22 = vector.broadcast %9 : vector<1x256xf32> to vector<16x256xf32>
    %23 = arith.mulf %22, %6 : vector<16x256xf32>
    %24 = vector.broadcast %10 : vector<1x256xf32> to vector<16x256xf32>
    %25 = arith.addf %23, %24 : vector<16x256xf32>
    %26 = arith.select %21, %25, %6 : vector<16x256xi1>, vector<16x256xf32>
    %27 = arith.select %15, %19, %26 : vector<16x256xi1>, vector<16x256xf32>
    %28 = arith.truncf %27 : vector<16x256xf32> to vector<16x256xbf16>
    %c0_7 = arith.constant 0 : index
    %c0_8 = arith.constant 0 : index
    %29 = vector.load %arg5[%c0_7, %c0_8] : memref<256x128xbf16, #tpu.memory_space<vmem>>, vector<256x128xbf16>
    %cst_9 = arith.constant dense<0.000000e+00> : vector<16x128xf32>
    %30 = tpu.matmul %28, %29, %cst_9 {dimension_numbers = #tpu.dot_dimension_numbers<[1], [0], [0], [1], [0, 0, 1, 1], [], []>} : vector<16x256xbf16>, vector<256x128xbf16>, vector<16x128xf32> -> vector<16x128xf32>
    %c0_10 = arith.constant 0 : index
    %c0_11 = arith.constant 0 : index
    %31 = vector.load %arg6[%c0_10, %c0_11] : memref<1x128xf32, #tpu.memory_space<vmem>>, vector<1x128xf32>
    %32 = vector.broadcast %31 : vector<1x128xf32> to vector<16x128xf32>
    %33 = arith.addf %30, %32 : vector<16x128xf32>
    %c0_12 = arith.constant 0 : index
    %c0_13 = arith.constant 0 : index
    %34 = vector.load %arg7[%c0_12, %c0_13] : memref<8x128xf32, #tpu.memory_space<vmem>>, vector<8x128xf32>
    %35 = vector.extract_strided_slice %34 {offsets = [0, 0], sizes = [1, 128], strides = [1, 1]} : vector<8x128xf32> to vector<1x128xf32>
    %36 = vector.extract_strided_slice %34 {offsets = [1, 0], sizes = [1, 128], strides = [1, 1]} : vector<8x128xf32> to vector<1x128xf32>
    %37 = vector.extract_strided_slice %34 {offsets = [2, 0], sizes = [1, 128], strides = [1, 1]} : vector<8x128xf32> to vector<1x128xf32>
    %38 = vector.extract_strided_slice %34 {offsets = [3, 0], sizes = [1, 128], strides = [1, 1]} : vector<8x128xf32> to vector<1x128xf32>
    %39 = vector.extract_strided_slice %34 {offsets = [4, 0], sizes = [1, 128], strides = [1, 1]} : vector<8x128xf32> to vector<1x128xf32>
    %40 = vector.extract_strided_slice %34 {offsets = [5, 0], sizes = [1, 128], strides = [1, 1]} : vector<8x128xf32> to vector<1x128xf32>
    %41 = vector.broadcast %38 : vector<1x128xf32> to vector<16x128xf32>
    %42 = arith.cmpf oge, %33, %41 : vector<16x128xf32>
    %43 = vector.broadcast %39 : vector<1x128xf32> to vector<16x128xf32>
    %44 = arith.mulf %43, %33 : vector<16x128xf32>
    %45 = vector.broadcast %40 : vector<1x128xf32> to vector<16x128xf32>
    %46 = arith.addf %44, %45 : vector<16x128xf32>
    %47 = vector.broadcast %35 : vector<1x128xf32> to vector<16x128xf32>
    %48 = arith.cmpf ole, %33, %47 : vector<16x128xf32>
    %49 = vector.broadcast %36 : vector<1x128xf32> to vector<16x128xf32>
    %50 = arith.mulf %49, %33 : vector<16x128xf32>
    %51 = vector.broadcast %37 : vector<1x128xf32> to vector<16x128xf32>
    %52 = arith.addf %50, %51 : vector<16x128xf32>
    %53 = arith.select %48, %52, %33 : vector<16x128xi1>, vector<16x128xf32>
    %54 = arith.select %42, %46, %53 : vector<16x128xi1>, vector<16x128xf32>
    %55 = arith.truncf %54 : vector<16x128xf32> to vector<16x128xbf16>
    %c0_14 = arith.constant 0 : index
    %c0_15 = arith.constant 0 : index
    %56 = vector.load %arg8[%c0_14, %c0_15] : memref<128x64xbf16, #tpu.memory_space<vmem>>, vector<128x64xbf16>
    %cst_16 = arith.constant dense<0.000000e+00> : vector<16x64xf32>
    %57 = tpu.matmul %55, %56, %cst_16 {dimension_numbers = #tpu.dot_dimension_numbers<[1], [0], [0], [1], [0, 0, 1, 1], [], []>} : vector<16x128xbf16>, vector<128x64xbf16>, vector<16x64xf32> -> vector<16x64xf32>
    %c0_17 = arith.constant 0 : index
    %c0_18 = arith.constant 0 : index
    %58 = vector.load %arg9[%c0_17, %c0_18] : memref<1x64xf32, #tpu.memory_space<vmem>>, vector<1x64xf32>
    %59 = vector.broadcast %58 : vector<1x64xf32> to vector<16x64xf32>
    %60 = arith.addf %57, %59 : vector<16x64xf32>
    %c0_19 = arith.constant 0 : index
    %c0_20 = arith.constant 0 : index
    %61 = vector.load %arg10[%c0_19, %c0_20] : memref<8x64xf32, #tpu.memory_space<vmem>>, vector<8x64xf32>
    %62 = vector.extract_strided_slice %61 {offsets = [0, 0], sizes = [1, 64], strides = [1, 1]} : vector<8x64xf32> to vector<1x64xf32>
    %63 = vector.extract_strided_slice %61 {offsets = [1, 0], sizes = [1, 64], strides = [1, 1]} : vector<8x64xf32> to vector<1x64xf32>
    %64 = vector.extract_strided_slice %61 {offsets = [2, 0], sizes = [1, 64], strides = [1, 1]} : vector<8x64xf32> to vector<1x64xf32>
    %65 = vector.extract_strided_slice %61 {offsets = [3, 0], sizes = [1, 64], strides = [1, 1]} : vector<8x64xf32> to vector<1x64xf32>
    %66 = vector.extract_strided_slice %61 {offsets = [4, 0], sizes = [1, 64], strides = [1, 1]} : vector<8x64xf32> to vector<1x64xf32>
    %67 = vector.extract_strided_slice %61 {offsets = [5, 0], sizes = [1, 64], strides = [1, 1]} : vector<8x64xf32> to vector<1x64xf32>
    %68 = vector.broadcast %65 : vector<1x64xf32> to vector<16x64xf32>
    %69 = arith.cmpf oge, %60, %68 : vector<16x64xf32>
    %70 = vector.broadcast %66 : vector<1x64xf32> to vector<16x64xf32>
    %71 = arith.mulf %70, %60 : vector<16x64xf32>
    %72 = vector.broadcast %67 : vector<1x64xf32> to vector<16x64xf32>
    %73 = arith.addf %71, %72 : vector<16x64xf32>
    %74 = vector.broadcast %62 : vector<1x64xf32> to vector<16x64xf32>
    %75 = arith.cmpf ole, %60, %74 : vector<16x64xf32>
    %76 = vector.broadcast %63 : vector<1x64xf32> to vector<16x64xf32>
    %77 = arith.mulf %76, %60 : vector<16x64xf32>
    %78 = vector.broadcast %64 : vector<1x64xf32> to vector<16x64xf32>
    %79 = arith.addf %77, %78 : vector<16x64xf32>
    %80 = arith.select %75, %79, %60 : vector<16x64xi1>, vector<16x64xf32>
    %81 = arith.select %69, %73, %80 : vector<16x64xi1>, vector<16x64xf32>
    %82 = arith.truncf %81 : vector<16x64xf32> to vector<16x64xbf16>
    %c0_21 = arith.constant 0 : index
    %c0_22 = arith.constant 0 : index
    %83 = vector.load %arg11[%c0_21, %c0_22] : memref<64x128xbf16, #tpu.memory_space<vmem>>, vector<64x128xbf16>
    %cst_23 = arith.constant dense<0.000000e+00> : vector<16x128xf32>
    %84 = tpu.matmul %82, %83, %cst_23 {dimension_numbers = #tpu.dot_dimension_numbers<[1], [0], [0], [1], [0, 0, 1, 1], [], []>} : vector<16x64xbf16>, vector<64x128xbf16>, vector<16x128xf32> -> vector<16x128xf32>
    %c0_24 = arith.constant 0 : index
    %c0_25 = arith.constant 0 : index
    %85 = vector.load %arg12[%c0_24, %c0_25] : memref<1x128xf32, #tpu.memory_space<vmem>>, vector<1x128xf32>
    %86 = vector.broadcast %85 : vector<1x128xf32> to vector<16x128xf32>
    %87 = arith.addf %84, %86 : vector<16x128xf32>
    %cst_26 = arith.constant dense<0xFF800000> : vector<16xf32>
    %88 = vector.multi_reduction <maximumf>, %87, %cst_26 [1] : vector<16x128xf32> to vector<16xf32>
    %89 = vector.shape_cast %88 : vector<16xf32> to vector<16x1xf32>
    %90 = vector.broadcast %89 : vector<16x1xf32> to vector<16x128xf32>
    %91 = arith.subf %87, %90 : vector<16x128xf32>
    %92 = math.exp %91 : vector<16x128xf32>
    %cst_27 = arith.constant dense<0.000000e+00> : vector<16xf32>
    %93 = vector.multi_reduction <add>, %92, %cst_27 [1] : vector<16x128xf32> to vector<16xf32>
    %94 = vector.shape_cast %93 : vector<16xf32> to vector<16x1xf32>
    %95 = math.log %94 : vector<16x1xf32>
    %96 = vector.broadcast %95 : vector<16x1xf32> to vector<16x128xf32>
    %97 = arith.subf %91, %96 : vector<16x128xf32>
    %c0_28 = arith.constant 0 : index
    %c0_29 = arith.constant 0 : index
    %98 = vector.load %arg13[%c0_28, %c0_29] : memref<16x128xf32, #tpu.memory_space<vmem>>, vector<16x128xf32>
    tpu.vector_store %arg13[%c0_28, %c0_29], %97 {strides = array<i32>} : memref<16x128xf32, #tpu.memory_space<vmem>>, vector<16x128xf32>,
    return
  }
  func.func @transform_0(%arg0: i32) -> (i32, i32) {
    %c0_i32 = arith.constant 0 : i32
    %c0_i32_0 = arith.constant 0 : i32
    return %arg0, %c0_i32 : i32, i32
  }
  func.func @transform_1(%arg0: i32) -> (i32, i32) {
    %c0_i32 = arith.constant 0 : i32
    %c0_i32_0 = arith.constant 0 : i32
    %c0_i32_1 = arith.constant 0 : i32
    return %c0_i32, %c0_i32_0 : i32, i32
  }
  func.func @transform_2(%arg0: i32) -> (i32, i32) {
    %c0_i32 = arith.constant 0 : i32
    %c0_i32_0 = arith.constant 0 : i32
    %c0_i32_1 = arith.constant 0 : i32
    return %c0_i32, %c0_i32_0 : i32, i32
  }
  func.func @transform_3(%arg0: i32) -> (i32, i32) {
    %c0_i32 = arith.constant 0 : i32
    %c0_i32_0 = arith.constant 0 : i32
    %c0_i32_1 = arith.constant 0 : i32
    return %c0_i32, %c0_i32_0 : i32, i32
  }
  func.func @transform_4(%arg0: i32) -> (i32, i32) {
    %c0_i32 = arith.constant 0 : i32
    %c0_i32_0 = arith.constant 0 : i32
    %c0_i32_1 = arith.constant 0 : i32
    return %c0_i32, %c0_i32_0 : i32, i32
  }
  func.func @transform_5(%arg0: i32) -> (i32, i32) {
    %c0_i32 = arith.constant 0 : i32
    %c0_i32_0 = arith.constant 0 : i32
    %c0_i32_1 = arith.constant 0 : i32
    return %c0_i32, %c0_i32_0 : i32, i32
  }
  func.func @transform_6(%arg0: i32) -> (i32, i32) {
    %c0_i32 = arith.constant 0 : i32
    %c0_i32_0 = arith.constant 0 : i32
    %c0_i32_1 = arith.constant 0 : i32
    return %c0_i32, %c0_i32_0 : i32, i32
  }
  func.func @transform_7(%arg0: i32) -> (i32, i32) {
    %c0_i32 = arith.constant 0 : i32
    %c0_i32_0 = arith.constant 0 : i32
    %c0_i32_1 = arith.constant 0 : i32
    return %c0_i32, %c0_i32_0 : i32, i32
  }
  func.func @transform_8(%arg0: i32) -> (i32, i32) {
    %c0_i32 = arith.constant 0 : i32
    %c0_i32_0 = arith.constant 0 : i32
    %c0_i32_1 = arith.constant 0 : i32
    return %c0_i32, %c0_i32_0 : i32, i32
  }
  func.func @transform_9(%arg0: i32) -> (i32, i32) {
    %c0_i32 = arith.constant 0 : i32
    %c0_i32_0 = arith.constant 0 : i32
    %c0_i32_1 = arith.constant 0 : i32
    return %c0_i32, %c0_i32_0 : i32, i32
  }
  func.func @transform_10(%arg0: i32) -> (i32, i32) {
    %c0_i32 = arith.constant 0 : i32
    %c0_i32_0 = arith.constant 0 : i32
    %c0_i32_1 = arith.constant 0 : i32
    return %c0_i32, %c0_i32_0 : i32, i32
  }
  func.func @transform_11(%arg0: i32) -> (i32, i32) {
    %c0_i32 = arith.constant 0 : i32
    %c0_i32_0 = arith.constant 0 : i32
    %c0_i32_1 = arith.constant 0 : i32
    return %c0_i32, %c0_i32_0 : i32, i32
  }
  func.func @transform_12(%arg0: i32) -> (i32, i32) {
    %c0_i32 = arith.constant 0 : i32
    %c0_i32_0 = arith.constant 0 : i32
    return %arg0, %c0_i32 : i32, i32
  }
}

</mosaic_0001>

<bundles_post_ra>
// kernel: tpu_custom_call.1
= control target key start
LH: loop header
LB: loop body
LE: loop exit
PB: predicated region body
PF: predicated region fallthrough
CT: control target
= control target key end

     0   :  { %17 = vsyncpa [#allocation3], 0  ;;  %s2282_s0 = inlined_call_operand.hbm [shape: f32[16,784], index: 0, kind: input, shape index: {}]   ;;  %s2283_s1 = inlined_call_operand.hbm [shape: bf16[784,256], index: 1, kind: input, shape index: {}]   ;;  %s2284_s2 = inlined_call_operand.vmem [shape: f32[1,256], index: 2, kind: input, shape index: {}]   ;;  %s2285_s3 = inlined_call_operand.vmem [shape: f32[8,256], index: 3, kind: input, shape index: {}]   ;;  %s2286_s4 = inlined_call_operand.hbm [shape: bf16[256,128], index: 4, kind: input, shape index: {}]   ;;  %s2287_s5 = inlined_call_operand.vmem [shape: f32[1,128], index: 5, kind: input, shape index: {}]   ;;  %s2288_s6 = inlined_call_operand.vmem [shape: f32[8,128], index: 6, kind: input, shape index: {}]   ;;  %s2289_s7 = inlined_call_operand.vmem [shape: bf16[128,64], index: 7, kind: input, shape index: {}]   ;;  %s2290_s8 = inlined_call_operand.vmem [shape: f32[1,64], index: 8, kind: input, shape index: {}]   ;;  %s2291_s9 = inlined_call_operand.vmem [shape: f32[8,64], index: 9, kind: input, shape index: {}]   ;;  %s2292_s10 = inlined_call_operand.vmem [shape: bf16[64,128], index: 10, kind: input, shape index: {}]   ;;  %s2293_s11 = inlined_call_operand.vmem [shape: f32[1,128], index: 11, kind: input, shape index: {}]   ;;  %s2294_s12 = inlined_call_operand.hbm [shape: f32[16,128], index: 12, kind: output, shape index: {}]  }
   0x1   :  { %18 = vsyncpa [#allocation6], 0  ;;  %s37_s23 = sshll.u32 %s2283_s1, 4  ;;  %s38_s23 = int_to_ptr.hbm [resolvable:$true] %s37_s23 }
   0x2   :  { %19 = vsyncpa [#allocation4], 0  ;;  %s2095_s24 = smov [#allocation5]   ;;  %s24_s28 = sshll.u32 %s2282_s0, 4  ;;  %s25_s28 = int_to_ptr.hbm [resolvable:$true] %s24_s28 }
   0x3   :  { %s39_s25 = sshll.u32 %s2095_s24, 4  ;;  %s2096_s29 = smov 128   ;;  %s40_s25 = int_to_ptr.vmem [resolvable:$true] %s39_s25 }
   0x4   :  { %s2097_s30 = smov 8   ;;  %s2098_s13 = smov [#allocation2]  }
   0x5   :  { %45 = dma.hbm_to_vmem [thread:$0]  %s38_s23, 12544, %s40_s25, [#allocation6], %s2096_s29, %s2096_s29, %s2097_s30  }
   0x6   :  { %s26_s14 = sshll.u32 %s2098_s13, 4  ;;  %s2099_s1 = smov 896   ;;  %s27_s14 = int_to_ptr.vmem [resolvable:$true] %s26_s14 }
   0x7   :  { %s2100_s15 = smov 56   ;;  %s54_s18 = sshll.u32 %s2286_s4, 4  ;;  %s55_s18 = int_to_ptr.hbm [resolvable:$true] %s54_s18 }
   0x8   :  { %32 = dma.hbm_to_vmem [thread:$0]  %s25_s28, 1792, %s27_s14, [#allocation3], %s2099_s1, %s2099_s1, %s2100_s15  }
   0x9   :  { %s2101_s19 = smov [#allocation7]   ;;  %s2102_s20 = smov 64  }
   0xa   :  { %s56_s0 = sshll.u32 %s2101_s19, 4  ;;  %s2103_s21 = smov 4   ;;  %s57_s0 = int_to_ptr.vmem [resolvable:$true] %s56_s0 }
   0xb   :  { %62 = dma.hbm_to_vmem [thread:$0]  %s55_s18, 2048, %s57_s0, [#allocation6], %s2102_s20, %s2102_s20, %s2103_s21  }
   0xc   :  { %2089 = dma.done.wait [#allocation3], 1792  }
   0xd   :  { %2090 = vsyncadd [#allocation3], 4294965504 }
   0xe   :  { %2091 = dma.done.wait [#allocation6], 14592  }
   0xf   :  { %2092 = vsyncadd [#allocation6], 4294952704  ;;  %v1397_v0 = vld [vmem:[#allocation5 + $0x70] sm:$0xf]  ;;  %v1861_v1 = vld [vmem:[#allocation5 + $0x74] sm:$0xf0] }
  0x10   :  { %v1525_v2 = vld [vmem:[#allocation5 + $0x170] sm:$0xf]  ;;  %v1398_v3 = vor.u32 %v1861_v1, %v1397_v0  ;;  %v1893_v4 = vld [vmem:[#allocation5 + $0x174] sm:$0xf0]  ;;  %v1389_v11 = vld [vmem:[#allocation5 + $0x60] sm:$0xf] }
  0x11   :  { %v1589_v5 = vld [vmem:[#allocation5 + $0x1f0] sm:$0xf]  ;;  %v1909_v6 = vld [vmem:[#allocation5 + $0x1f4] sm:$0xf0]  ;;  %v1526_v7 = vor.u32 %v1893_v4, %v1525_v2  ;;  %v1859_v13 = vld [vmem:[#allocation5 + $0x64] sm:$0xf0] }
  0x12   :  { %v1590_v8 = vor.u32 %v1909_v6, %v1589_v5  ;;  %v1461_v9 = vld [vmem:[#allocation5 + $0xf0] sm:$0xf]  ;;  %v1877_v10 = vld [vmem:[#allocation5 + $0xf4] sm:$0xf0]  ;;  %709 = vmatpush.bf16.msra.mxu0 %v1398_v3  ;;  %v1517_v14 = vld [vmem:[#allocation5 + $0x160] sm:$0xf]  ;;  %v1390_v16 = vor.u32 %v1859_v13, %v1389_v11 }
  0x13   :  { %v1462_v12 = vor.u32 %v1877_v10, %v1461_v9  ;;  %v1891_v15 = vld [vmem:[#allocation5 + $0x164] sm:$0xf0]  ;;  %737 = vmatpush.bf16.msra.mxu2 %v1526_v7  ;;  %v1581_v18 = vld [vmem:[#allocation5 + $0x1e0] sm:$0xf]  ;;  %v1381_v23 = vld [vmem:[#allocation5 + $0x50] sm:$0xf] }
  0x14   :  { %751 = vmatpush.bf16.msra.mxu3 %v1590_v8  ;;  %v1518_v17 = vor.u32 %v1891_v15, %v1517_v14  ;;  %v1907_v19 = vld [vmem:[#allocation5 + $0x1e4] sm:$0xf0]  ;;  %v1453_v20 = vld [vmem:[#allocation5 + $0xe0] sm:$0xf]  ;;  %v1857_v24 = vld [vmem:[#allocation5 + $0x54] sm:$0xf0] }
  0x15   :  { %723 = vmatpush.bf16.msra.mxu1 %v1462_v12  ;;  %v1582_v21 = vor.u32 %v1907_v19, %v1581_v18  ;;  %v1875_v22 = vld [vmem:[#allocation5 + $0xe4] sm:$0xf0]  ;;  %v1509_v26 = vld [vmem:[#allocation5 + $0x150] sm:$0xf]  ;;  %v1889_v27 = vld [vmem:[#allocation5 + $0x154] sm:$0xf0]  ;;  %v1382_v29 = vor.u32 %v1857_v24, %v1381_v23 }
  0x16   :  { %v1454_v25 = vor.u32 %v1875_v22, %v1453_v20  ;;  %v1573_v28 = vld [vmem:[#allocation5 + $0x1d0] sm:$0xf]  ;;  %710 = vmatpush.bf16.msra.mxu0 %v1390_v16  ;;  %v1905_v30 = vld [vmem:[#allocation5 + $0x1d4] sm:$0xf0]  ;;  %v1510_v33 = vor.u32 %v1889_v27, %v1509_v26  ;;  %v1373_v35 = vld [vmem:[#allocation5 + $0x40] sm:$0xf] }
  0x17   :  { %v1445_v31 = vld [vmem:[#allocation5 + $0xd0] sm:$0xf]  ;;  %v1873_v32 = vld [vmem:[#allocation5 + $0xd4] sm:$0xf0]  ;;  %738 = vmatpush.bf16.msra.mxu2 %v1518_v17  ;;  %v1574_v34 = vor.u32 %v1905_v30, %v1573_v28  ;;  %v1855_v36 = vld [vmem:[#allocation5 + $0x44] sm:$0xf0] }
  0x18   :  { %752 = vmatpush.bf16.msra.mxu3 %v1582_v21  ;;  %v1501_v37 = vld [vmem:[#allocation5 + $0x140] sm:$0xf]  ;;  %v1446_v38 = vor.u32 %v1873_v32, %v1445_v31  ;;  %v1887_v39 = vld [vmem:[#allocation5 + $0x144] sm:$0xf0]  ;;  %v1374_v44 = vor.u32 %v1855_v36, %v1373_v35  ;;  %v1365_v47 = vld [vmem:[#allocation5 + $0x30] sm:$0xf] }
  0x19   :  { %724 = vmatpush.bf16.msra.mxu1 %v1454_v25  ;;  %v1565_v40 = vld [vmem:[#allocation5 + $0x1c0] sm:$0xf]  ;;  %v1903_v41 = vld [vmem:[#allocation5 + $0x1c4] sm:$0xf0]  ;;  %v1502_v45 = vor.u32 %v1887_v39, %v1501_v37  ;;  %v1853_v48 = vld [vmem:[#allocation5 + $0x34] sm:$0xf0] }
  0x1a   :  { %v1437_v42 = vld [vmem:[#allocation5 + $0xc0] sm:$0xf]  ;;  %v1871_v43 = vld [vmem:[#allocation5 + $0xc4] sm:$0xf0]  ;;  %711 = vmatpush.bf16.msra.mxu0 %v1382_v29  ;;  %v1566_v46 = vor.u32 %v1903_v41, %v1565_v40  ;;  %v1493_v49 = vld [vmem:[#allocation5 + $0x130] sm:$0xf]  ;;  %v1366_v56 = vor.u32 %v1853_v48, %v1365_v47 }
  0x1b   :  { %739 = vmatpush.bf16.msra.mxu2 %v1510_v33  ;;  %v1438_v50 = vor.u32 %v1871_v43, %v1437_v42  ;;  %v1885_v51 = vld [vmem:[#allocation5 + $0x134] sm:$0xf0]  ;;  %v1557_v52 = vld [vmem:[#allocation5 + $0x1b0] sm:$0xf]  ;;  %v1357_v59 = vld [vmem:[#allocation5 + $0x20] sm:$0xf] }
  0x1c   :  { %753 = vmatpush.bf16.msra.mxu3 %v1574_v34  ;;  %v1901_v53 = vld [vmem:[#allocation5 + $0x1b4] sm:$0xf0]  ;;  %v1429_v54 = vld [vmem:[#allocation5 + $0xb0] sm:$0xf]  ;;  %v1494_v57 = vor.u32 %v1885_v51, %v1493_v49  ;;  %v1851_v60 = vld [vmem:[#allocation5 + $0x24] sm:$0xf0] }
  0x1d   :  { %725 = vmatpush.bf16.msra.mxu1 %v1446_v38  ;;  %v1869_v55 = vld [vmem:[#allocation5 + $0xb4] sm:$0xf0]  ;;  %v1558_v58 = vor.u32 %v1901_v53, %v1557_v52  ;;  %v1485_v61 = vld [vmem:[#allocation5 + $0x120] sm:$0xf]  ;;  %v1883_v63 = vld [vmem:[#allocation5 + $0x124] sm:$0xf0]  ;;  %v1358_v4 = vor.u32 %v1851_v60, %v1357_v59 }
  0x1e   :  { %712 = vmatpush.bf16.msra.mxu0 %v1374_v44  ;;  %v1430_v62 = vor.u32 %v1869_v55, %v1429_v54  ;;  %v1549_v0 = vld [vmem:[#allocation5 + $0x1a0] sm:$0xf]  ;;  %v1899_v1 = vld [vmem:[#allocation5 + $0x1a4] sm:$0xf0]  ;;  %v1349_v5 = vld [vmem:[#allocation5 + $0x10] sm:$0xf]  ;;  %v1486_v6 = vor.u32 %v1883_v63, %v1485_v61 }
  0x1f   :  { %740 = vmatpush.bf16.msra.mxu2 %v1502_v45  ;;  %v1421_v2 = vld [vmem:[#allocation5 + $0xa0] sm:$0xf]  ;;  %v1867_v3 = vld [vmem:[#allocation5 + $0xa4] sm:$0xf0]  ;;  %v1550_v7 = vor.u32 %v1899_v1, %v1549_v0  ;;  %v1849_v8 = vld [vmem:[#allocation5 + $0x14] sm:$0xf0] }
  0x20   :  { %754 = vmatpush.bf16.msra.mxu3 %v1566_v46  ;;  %v1477_v9 = vld [vmem:[#allocation5 + $0x110] sm:$0xf]  ;;  %v1881_v10 = vld [vmem:[#allocation5 + $0x114] sm:$0xf0]  ;;  %v1422_v11 = vor.u32 %v1867_v3, %v1421_v2  ;;  %v1341_v16 = vld [vmem:[#allocation5] sm:$0xf]  ;;  %v1350_v18 = vor.u32 %v1849_v8, %v1349_v5 }
  0x21   :  { %726 = vmatpush.bf16.msra.mxu1 %v1438_v50  ;;  %v1541_v12 = vld [vmem:[#allocation5 + $0x190] sm:$0xf]  ;;  %v1897_v13 = vld [vmem:[#allocation5 + $0x194] sm:$0xf0]  ;;  %v1847_v17 = vld [vmem:[#allocation5 + $0x4] sm:$0xf0]  ;;  %v1478_v23 = vor.u32 %v1881_v10, %v1477_v9 }
  0x22   :  { %713 = vmatpush.bf16.msra.mxu0 %v1366_v56  ;;  %v1413_v14 = vld [vmem:[#allocation5 + $0x90] sm:$0xf]  ;;  %v1865_v15 = vld [vmem:[#allocation5 + $0x94] sm:$0xf0]  ;;  %v1469_v19 = vld [vmem:[#allocation5 + $0x100] sm:$0xf]  ;;  %v1542_v24 = vor.u32 %v1897_v13, %v1541_v12  ;;  %v1342_v35 = vor.u32 %v1847_v17, %v1341_v16 }
  0x23   :  { %741 = vmatpush.bf16.msra.mxu2 %v1494_v57  ;;  %v1879_v20 = vld [vmem:[#allocation5 + $0x104] sm:$0xf0]  ;;  %v1533_v21 = vld [vmem:[#allocation5 + $0x180] sm:$0xf]  ;;  %v1653_v25 = vld [vmem:[#allocation5 + $0x270] sm:$0xf]  ;;  %v1414_v28 = vor.u32 %v1865_v15, %v1413_v14 }
  0x24   :  { %755 = vmatpush.bf16.msra.mxu3 %v1558_v58  ;;  %v1895_v22 = vld [vmem:[#allocation5 + $0x184] sm:$0xf0]  ;;  %v1925_v26 = vld [vmem:[#allocation5 + $0x274] sm:$0xf0]  ;;  %v1860_v27 = vld [vmem:[#allocation5 + $0x74] sm:$0xf]  ;;  %v1470_v39 = vor.u32 %v1879_v20, %v1469_v19 }
  0x25   :  { %727 = vmatpush.bf16.msra.mxu1 %v1430_v62  ;;  %v1399_v29 = vld [vmem:[#allocation5 + $0x78] sm:$0xf0]  ;;  %v1405_v30 = vld [vmem:[#allocation5 + $0x80] sm:$0xf]  ;;  %v1863_v31 = vld [vmem:[#allocation5 + $0x84] sm:$0xf0]  ;;  %v1534_v40 = vor.u32 %v1895_v22, %v1533_v21  ;;  %v1654_v44 = vor.u32 %v1925_v26, %v1653_v25 }
  0x26   :  { %714 = vmatpush.bf16.msra.mxu0 %v1358_v4  ;;  %v92_v32 = vld [vmem:[#allocation2 + $0x10] sm:$0xff]  ;;  %v99_v33 = vld [vmem:[#allocation2 + $0x48] sm:$0xff]  ;;  %v1717_v34 = vld [vmem:[#allocation5 + $0x2f0] sm:$0xf]  ;;  %v1402_v45 = vor.u32 %v1860_v27, %v1399_v29  ;;  %v1406_v49 = vor.u32 %v1863_v31, %v1405_v30  ;;  %vm705_vm0 = vcmask 130048   ;;  %s1325_s18 = sshll.u32 %s2294_s12, 4  ;;  %s1326_s18 = int_to_ptr.hbm [resolvable:$true] %s1325_s18 }
  0x27   :  { %742 = vmatpush.bf16.msra.mxu2 %v1486_v6  ;;  %v1941_v36 = vld [vmem:[#allocation5 + $0x2f4] sm:$0xf0]  ;;  %v1725_v37 = vld [vmem:[#allocation5 + $0x300] sm:$0xf]  ;;  %v1943_v38 = vld [vmem:[#allocation5 + $0x304] sm:$0xf0]  ;;  %v2182_v54 = vpack.c.bf16 %v99_v33, %v92_v32 }
  0x28   :  { %756 = vmatpush.bf16.msra.mxu3 %v1550_v7  ;;  %v1876_v41 = vld [vmem:[#allocation5 + $0xf4] sm:$0xf]  ;;  %v1463_v42 = vld [vmem:[#allocation5 + $0xf8] sm:$0xf0]  ;;  %v97_v46 = vld [vmem:[#allocation2 + $0x38] sm:$0xff]  ;;  %v1726_v50 = vor.u32 %v1943_v38, %v1725_v37  ;;  %v1718_v55 = vor.u32 %v1941_v36, %v1717_v34 }
  0x29   :  { %728 = vmatpush.bf16.msra.mxu1 %v1422_v11  ;;  %v90_v43 = vld [vmem:[#allocation2] sm:$0xff]  ;;  %v93_v47 = vld [vmem:[#allocation2 + $0x18] sm:$0xff]  ;;  %v100_v48 = vld [vmem:[#allocation2 + $0x50] sm:$0xff]  ;;  %v1466_v59 = vor.u32 %v1876_v41, %v1463_v42 }
  0x2a   :  { %715 = vmatpush.bf16.msra.mxu0 %v1350_v18  ;;  %v1645_v51 = vld [vmem:[#allocation5 + $0x260] sm:$0xf]  ;;  %v1923_v52 = vld [vmem:[#allocation5 + $0x264] sm:$0xf0]  ;;  %v1858_v53 = vld [vmem:[#allocation5 + $0x64] sm:$0xf]  ;;  %v2184_v60 = vpack.c.bf16 %v97_v46, %v90_v43  ;;  %v2186_v63 = vpack.c.bf16 %v100_v48, %v93_v47 }
  0x2b   :  { %743 = vmatpush.bf16.msra.mxu2 %v1478_v23  ;;  %v1391_v56 = vld [vmem:[#allocation5 + $0x68] sm:$0xf0]  ;;  %v91_v57 = vld [vmem:[#allocation2 + $0x8] sm:$0xff]  ;;  %v98_v58 = vld [vmem:[#allocation2 + $0x40] sm:$0xff]  ;;  %v1646_v0 = vor.u32 %v1923_v52, %v1645_v51 }
  0x2c   :  { %757 = vmatpush.bf16.msra.mxu3 %v1542_v24  ;;  %v1709_v61 = vld [vmem:[#allocation5 + $0x2e0] sm:$0xf]  ;;  %v1939_v62 = vld [vmem:[#allocation5 + $0x2e4] sm:$0xf0]  ;;  %v1874_v1 = vld [vmem:[#allocation5 + $0xe4] sm:$0xf]  ;;  %v1394_v3 = vor.u32 %v1858_v53, %v1391_v56  ;;  %v2188_v4 = vpack.c.bf16 %v98_v58, %v91_v57 }
  0x2d   :  { %729 = vmatpush.bf16.msra.mxu1 %v1414_v28  ;;  %v1455_v2 = vld [vmem:[#allocation5 + $0xe8] sm:$0xf0]  ;;  %v1637_v5 = vld [vmem:[#allocation5 + $0x250] sm:$0xf]  ;;  %v1921_v6 = vld [vmem:[#allocation5 + $0x254] sm:$0xf0]  ;;  %v1710_v7 = vor.u32 %v1939_v62, %v1709_v61 }
  0x2e   :  { %716 = vmatpush.bf16.msra.mxu0 %v1342_v35  ;;  %v1856_v8 = vld [vmem:[#allocation5 + $0x54] sm:$0xf]  ;;  %v1383_v9 = vld [vmem:[#allocation5 + $0x58] sm:$0xf0]  ;;  %v1458_v10 = vor.u32 %v1874_v1, %v1455_v2  ;;  %v1701_v11 = vld [vmem:[#allocation5 + $0x2d0] sm:$0xf]  ;;  %v1638_v13 = vor.u32 %v1921_v6, %v1637_v5 }
  0x2f   :  { %744 = vmatpush.bf16.msra.mxu2 %v1470_v39  ;;  %v1937_v12 = vld [vmem:[#allocation5 + $0x2d4] sm:$0xf0]  ;;  %v1872_v14 = vld [vmem:[#allocation5 + $0xd4] sm:$0xf]  ;;  %v1447_v15 = vld [vmem:[#allocation5 + $0xd8] sm:$0xf0]  ;;  %v1386_v16 = vor.u32 %v1856_v8, %v1383_v9 }
  0x30   :  { %758 = vmatpush.bf16.msra.mxu3 %v1534_v40  ;;  %v1629_v17 = vld [vmem:[#allocation5 + $0x240] sm:$0xf]  ;;  %v1919_v18 = vld [vmem:[#allocation5 + $0x244] sm:$0xf0]  ;;  %v1702_v19 = vor.u32 %v1937_v12, %v1701_v11  ;;  %v1854_v20 = vld [vmem:[#allocation5 + $0x44] sm:$0xf]  ;;  %v1450_v22 = vor.u32 %v1872_v14, %v1447_v15 }
  0x31   :  { %730 = vmatpush.bf16.msra.mxu1 %v1406_v49  ;;  %717 = vmatmul.bf16.vlgmr.msra.gmra.mxu0 %v2184_v60  ;;  %v1375_v21 = vld [vmem:[#allocation5 + $0x48] sm:$0xf0]  ;;  %v1693_v23 = vld [vmem:[#allocation5 + $0x2c0] sm:$0xf]  ;;  %v1935_v24 = vld [vmem:[#allocation5 + $0x2c4] sm:$0xf0]  ;;  %v1630_v25 = vor.u32 %v1919_v18, %v1629_v17 }
  0x32   :  { %765 = vmatpush.bf16.msrb.mxu0 %v1654_v44  ;;  %745 = vmatmul.bf16.vlgmr.msra.gmra.mxu2 %v2182_v54  ;;  %v1870_v26 = vld [vmem:[#allocation5 + $0xc4] sm:$0xf]  ;;  %v1439_v27 = vld [vmem:[#allocation5 + $0xc8] sm:$0xf0]  ;;  %v1378_v28 = vor.u32 %v1854_v20, %v1375_v21  ;;  %v1621_v29 = vld [vmem:[#allocation5 + $0x230] sm:$0xf]  ;;  %v1694_v31 = vor.u32 %v1935_v24, %v1693_v23 }
  0x33   :  { %800 = vmatpush.bf16.msrb.mxu2 %v1726_v50  ;;  %759 = vmatmul.bf16.vlgmr.msra.gmra.mxu3 %v2186_v63  ;;  %v1917_v30 = vld [vmem:[#allocation5 + $0x234] sm:$0xf0]  ;;  %v1852_v32 = vld [vmem:[#allocation5 + $0x34] sm:$0xf]  ;;  %v1367_v33 = vld [vmem:[#allocation5 + $0x38] sm:$0xf0]  ;;  %v1442_v35 = vor.u32 %v1870_v26, %v1439_v27 }
  0x34   :  { %807 = vmatpush.bf16.msrb.mxu3 %v1402_v45  ;;  %731 = vmatmul.bf16.vlgmr.msra.gmra.mxu1 %v2188_v4  ;;  %v1685_v34 = vld [vmem:[#allocation5 + $0x2b0] sm:$0xf]  ;;  %v1933_v36 = vld [vmem:[#allocation5 + $0x2b4] sm:$0xf0]  ;;  %v96_v37 = vld [vmem:[#allocation2 + $0x30] sm:$0xff]  ;;  %v1622_v39 = vor.u32 %v1917_v30, %v1621_v29  ;;  %v1370_v42 = vor.u32 %v1852_v32, %v1367_v33 }
  0x35   :  { %779 = vmatpush.bf16.msrb.mxu1 %v1718_v55  ;;  %v103_v38 = vld [vmem:[#allocation2 + $0x68] sm:$0xff]  ;;  %v1868_v40 = vld [vmem:[#allocation5 + $0xb4] sm:$0xf]  ;;  %v1613_v43 = vld [vmem:[#allocation5 + $0x220] sm:$0xf]  ;;  %v1686_v45 = vor.u32 %v1933_v36, %v1685_v34 }
  0x36   :  { %766 = vmatpush.bf16.msrb.mxu0 %v1646_v0  ;;  %v1431_v41 = vld [vmem:[#allocation5 + $0xb8] sm:$0xf0]  ;;  %v1915_v44 = vld [vmem:[#allocation5 + $0x224] sm:$0xf0]  ;;  %v1850_v46 = vld [vmem:[#allocation5 + $0x24] sm:$0xf]  ;;  %v2194_v48 = vpack.c.bf16 %v103_v38, %v96_v37 }
  0x37   :  { %821 = vmatpush.bf16.msra.mxu2 %v1466_v59  ;;  %v1359_v47 = vld [vmem:[#allocation5 + $0x28] sm:$0xf0]  ;;  %v1434_v49 = vor.u32 %v1868_v40, %v1431_v41  ;;  %v1677_v50 = vld [vmem:[#allocation5 + $0x2a0] sm:$0xf]  ;;  %v1931_v51 = vld [vmem:[#allocation5 + $0x2a4] sm:$0xf0]  ;;  %v1614_v52 = vor.u32 %v1915_v44, %v1613_v43 }
  0x38   :  { %808 = vmatpush.bf16.msrb.mxu3 %v1394_v3  ;;  %v1866_v53 = vld [vmem:[#allocation5 + $0xa4] sm:$0xf]  ;;  %v1423_v55 = vld [vmem:[#allocation5 + $0xa8] sm:$0xf0]  ;;  %v1362_v56 = vor.u32 %v1850_v46, %v1359_v47  ;;  %v1605_v57 = vld [vmem:[#allocation5 + $0x210] sm:$0xf]  ;;  %v1678_v61 = vor.u32 %v1931_v51, %v1677_v50 }
  0x39   :  { %780 = vmatpush.bf16.msrb.mxu1 %v1710_v7  ;;  %v1913_v58 = vld [vmem:[#allocation5 + $0x214] sm:$0xf0]  ;;  %v1848_v59 = vld [vmem:[#allocation5 + $0x14] sm:$0xf]  ;;  %v1351_v62 = vld [vmem:[#allocation5 + $0x18] sm:$0xf0]  ;;  %v1426_v2 = vor.u32 %v1866_v53, %v1423_v55 }
  0x3a   :  { %767 = vmatpush.bf16.msrb.mxu0 %v1638_v13  ;;  %v1669_v0 = vld [vmem:[#allocation5 + $0x290] sm:$0xf]  ;;  %v1929_v1 = vld [vmem:[#allocation5 + $0x294] sm:$0xf0]  ;;  %v1864_v3 = vld [vmem:[#allocation5 + $0x94] sm:$0xf]  ;;  %v1606_v7 = vor.u32 %v1913_v58, %v1605_v57  ;;  %v1354_v11 = vor.u32 %v1848_v59, %v1351_v62 }
  0x3b   :  { %822 = vmatpush.bf16.msra.mxu2 %v1458_v10  ;;  %v1415_v5 = vld [vmem:[#allocation5 + $0x98] sm:$0xf0]  ;;  %v1597_v6 = vld [vmem:[#allocation5 + $0x200] sm:$0xf]  ;;  %v1911_v8 = vld [vmem:[#allocation5 + $0x204] sm:$0xf0]  ;;  %v1670_v15 = vor.u32 %v1929_v1, %v1669_v0 }
  0x3c   :  { %809 = vmatpush.bf16.msrb.mxu3 %v1386_v16  ;;  %v1846_v9 = vld [vmem:[#allocation5 + $0x4] sm:$0xf]  ;;  %v1343_v10 = vld [vmem:[#allocation5 + $0x8] sm:$0xf0]  ;;  %v1892_v12 = vld [vmem:[#allocation5 + $0x174] sm:$0xf]  ;;  %v1598_v23 = vor.u32 %v1911_v8, %v1597_v6 }
  0x3d   :  { %781 = vmatpush.bf16.msrb.mxu1 %v1702_v19  ;;  %v1527_v13 = vld [vmem:[#allocation5 + $0x178] sm:$0xf0]  ;;  %v1924_v14 = vld [vmem:[#allocation5 + $0x274] sm:$0xf]  ;;  %v1661_v17 = vld [vmem:[#allocation5 + $0x280] sm:$0xf]  ;;  %v1418_v19 = vor.u32 %v1864_v3, %v1415_v5  ;;  %v1346_v27 = vor.u32 %v1846_v9, %v1343_v10 }
  0x3e   :  { %768 = vmatpush.bf16.msrb.mxu0 %v1630_v25  ;;  %v1655_v16 = vld [vmem:[#allocation5 + $0x278] sm:$0xf0]  ;;  %v1927_v18 = vld [vmem:[#allocation5 + $0x284] sm:$0xf0]  ;;  %v94_v20 = vld [vmem:[#allocation2 + $0x20] sm:$0xff] }
  0x3f   :  { %823 = vmatpush.bf16.msra.mxu2 %v1450_v22  ;;  %v101_v21 = vld [vmem:[#allocation2 + $0x58] sm:$0xff]  ;;  %v1862_v22 = vld [vmem:[#allocation5 + $0x84] sm:$0xf]  ;;  %v1908_v25 = vld [vmem:[#allocation5 + $0x1f4] sm:$0xf]  ;;  %v1658_v32 = vor.u32 %v1924_v14, %v1655_v16  ;;  %v1662_v33 = vor.u32 %v1927_v18, %v1661_v17 }
  0x40   :  { %810 = vmatpush.bf16.msrb.mxu3 %v1378_v28  ;;  %v1407_v24 = vld [vmem:[#allocation5 + $0x88] sm:$0xf0]  ;;  %v1591_v26 = vld [vmem:[#allocation5 + $0x1f8] sm:$0xf0]  ;;  %v1530_v28 = vor.u32 %v1892_v12, %v1527_v13  ;;  %v1940_v29 = vld [vmem:[#allocation5 + $0x2f4] sm:$0xf]  ;;  %v2198_v37 = vpack.c.bf16 %v101_v21, %v94_v20 }
  0x41   :  { %782 = vmatpush.bf16.msrb.mxu1 %v1694_v31  ;;  %v1719_v30 = vld [vmem:[#allocation5 + $0x2f8] sm:$0xf0]  ;;  %v102_v34 = vld [vmem:[#allocation2 + $0x60] sm:$0xff]  ;;  %v1519_v36 = vld [vmem:[#allocation5 + $0x168] sm:$0xf0]  ;;  %v1410_v38 = vor.u32 %v1862_v22, %v1407_v24  ;;  %v1594_v41 = vor.u32 %v1908_v25, %v1591_v26 }
  0x42   :  { %769 = vmatpush.bf16.msrb.mxu0 %v1622_v39  ;;  %1731 = vmatmul.msk.bf16.vlgmr.msrb.gmra.mxu2 %vm705_vm0, %v2194_v48  ;;  %v95_v31 = vld [vmem:[#allocation2 + $0x28] sm:$0xff]  ;;  %v1922_v39 = vld [vmem:[#allocation5 + $0x264] sm:$0xf]  ;;  %v1647_v40 = vld [vmem:[#allocation5 + $0x268] sm:$0xf0] }
  0x43   :  { %824 = vmatpush.bf16.msra.mxu2 %v1442_v35  ;;  %v1890_v35 = vld [vmem:[#allocation5 + $0x164] sm:$0xf]  ;;  %v2200_v44 = vpack.c.bf16 %v102_v34, %v95_v31  ;;  %v1583_v46 = vld [vmem:[#allocation5 + $0x1e8] sm:$0xf0]  ;;  %v1650_v50 = vor.u32 %v1922_v39, %v1647_v40  ;;  %v1888_v51 = vld [vmem:[#allocation5 + $0x154] sm:$0xf] }
  0x44   :  { %811 = vmatpush.bf16.msrb.mxu3 %v1370_v42  ;;  %v1722_v42 = vor.u32 %v1940_v29, %v1719_v30  ;;  %v1906_v43 = vld [vmem:[#allocation5 + $0x1e4] sm:$0xf]  ;;  %v1920_v53 = vld [vmem:[#allocation5 + $0x254] sm:$0xf]  ;;  %v1639_v55 = vld [vmem:[#allocation5 + $0x258] sm:$0xf0] }
  0x45   :  { %783 = vmatpush.bf16.msrb.mxu1 %v1686_v45  ;;  %v1522_v45 = vor.u32 %v1890_v35, %v1519_v36  ;;  %v1938_v47 = vld [vmem:[#allocation5 + $0x2e4] sm:$0xf]  ;;  %v1904_v58 = vld [vmem:[#allocation5 + $0x1d4] sm:$0xf]  ;;  %v1703_v0 = vld [vmem:[#allocation5 + $0x2d8] sm:$0xf0]  ;;  %v1642_v1 = vor.u32 %v1920_v53, %v1639_v55 }
  0x46   :  { %770 = vmatpush.bf16.msrb.mxu0 %v1614_v52  ;;  %v1511_v52 = vld [vmem:[#allocation5 + $0x158] sm:$0xf0]  ;;  %v1936_v62 = vld [vmem:[#allocation5 + $0x2d4] sm:$0xf]  ;;  %v1503_v3 = vld [vmem:[#allocation5 + $0x148] sm:$0xf0] }
  0x47   :  { %825 = vmatpush.bf16.msra.mxu2 %v1434_v49  ;;  %v1711_v49 = vld [vmem:[#allocation5 + $0x2e8] sm:$0xf0]  ;;  %v1514_v59 = vor.u32 %v1888_v51, %v1511_v52  ;;  %v1918_v5 = vld [vmem:[#allocation5 + $0x244] sm:$0xf]  ;;  %v1706_v9 = vor.u32 %v1936_v62, %v1703_v0  ;;  %v1495_v16 = vld [vmem:[#allocation5 + $0x138] sm:$0xf0] }
  0x48   :  { %812 = vmatpush.bf16.msrb.mxu3 %v1362_v56  ;;  %v1586_v56 = vor.u32 %v1906_v43, %v1583_v46  ;;  %v1714_v57 = vor.u32 %v1938_v47, %v1711_v49  ;;  %v1631_v6 = vld [vmem:[#allocation5 + $0x248] sm:$0xf0]  ;;  %v1916_v17 = vld [vmem:[#allocation5 + $0x234] sm:$0xf]  ;;  %v1559_v21 = vld [vmem:[#allocation5 + $0x1b8] sm:$0xf0] }
  0x49   :  { %784 = vmatpush.bf16.msrb.mxu1 %v1678_v61  ;;  %v1575_v61 = vld [vmem:[#allocation5 + $0x1d8] sm:$0xf0]  ;;  %v1567_v10 = vld [vmem:[#allocation5 + $0x1c8] sm:$0xf0]  ;;  %v1634_v14 = vor.u32 %v1918_v5, %v1631_v6  ;;  %v1932_v22 = vld [vmem:[#allocation5 + $0x2b4] sm:$0xf] }
  0x4a   :  { %771 = vmatpush.bf16.msrb.mxu0 %v1606_v7  ;;  %v1902_v7 = vld [vmem:[#allocation5 + $0x1c4] sm:$0xf]  ;;  %v1578_v8 = vor.u32 %v1904_v58, %v1575_v61  ;;  %v1695_v12 = vld [vmem:[#allocation5 + $0x2c8] sm:$0xf0]  ;;  %v1479_v39 = vld [vmem:[#allocation5 + $0x118] sm:$0xf0] }
  0x4b   :  { %826 = vmatpush.bf16.msra.mxu2 %v1426_v2  ;;  %v1886_v2 = vld [vmem:[#allocation5 + $0x144] sm:$0xf]  ;;  %v1570_v18 = vor.u32 %v1902_v7, %v1567_v10  ;;  %v1487_v26 = vld [vmem:[#allocation5 + $0x128] sm:$0xf0]  ;;  %v1912_v40 = vld [vmem:[#allocation5 + $0x214] sm:$0xf] }
  0x4c   :  { %813 = vmatpush.bf16.msrb.mxu3 %v1354_v11  ;;  %v1934_v11 = vld [vmem:[#allocation5 + $0x2c4] sm:$0xf]  ;;  %v1506_v13 = vor.u32 %v1886_v2, %v1503_v3  ;;  %v1679_v35 = vld [vmem:[#allocation5 + $0x2a8] sm:$0xf0]  ;;  %v1543_v47 = vld [vmem:[#allocation5 + $0x198] sm:$0xf0] }
  0x4d   :  { %785 = vmatpush.bf16.msrb.mxu1 %v1670_v15  ;;  %v1884_v15 = vld [vmem:[#allocation5 + $0x134] sm:$0xf]  ;;  %v1882_v25 = vld [vmem:[#allocation5 + $0x124] sm:$0xf]  ;;  %v1471_v53 = vld [vmem:[#allocation5 + $0x108] sm:$0xf0] }
  0x4e   :  { %772 = vmatpush.bf16.msrb.mxu0 %v1598_v23  ;;  %v1498_v20 = vor.u32 %v1884_v15, %v1495_v16  ;;  %v1687_v23 = vld [vmem:[#allocation5 + $0x2b8] sm:$0xf0]  ;;  %v1898_v31 = vld [vmem:[#allocation5 + $0x1a4] sm:$0xf]  ;;  %v1928_v49 = vld [vmem:[#allocation5 + $0x294] sm:$0xf] }
  0x4f   :  { %827 = vmatpush.bf16.msra.mxu2 %v1418_v19  ;;  %v1900_v19 = vld [vmem:[#allocation5 + $0x1b4] sm:$0xf]  ;;  %v1690_v30 = vor.u32 %v1932_v22, %v1687_v23  ;;  %v1930_v34 = vld [vmem:[#allocation5 + $0x2a4] sm:$0xf]  ;;  %v1727_v58 = vld [vmem:[#allocation5 + $0x308] sm:$0xf0] }
  0x50   :  { %814 = vmatpush.bf16.msrb.mxu3 %v1346_v27  ;;  %v1914_v27 = vld [vmem:[#allocation5 + $0x224] sm:$0xf]  ;;  %v1562_v29 = vor.u32 %v1900_v19, %v1559_v21  ;;  %v1682_v43 = vor.u32 %v1930_v34, %v1679_v35  ;;  %v1663_v5 = vld [vmem:[#allocation5 + $0x288] sm:$0xf0]  ;;  %v1944_v16 = vld [vmem:[#allocation7] sm:$0xff] }
  0x51   :  { %786 = vmatpush.bf16.msrb.mxu1 %v1662_v33  ;;  %773 = vmatmul.bf16.vlgmr.msrb.gmra.mxu0 %v2198_v37  ;;  %v1551_v33 = vld [vmem:[#allocation5 + $0x1a8] sm:$0xf0]  ;;  %v1878_v52 = vld [vmem:[#allocation5 + $0x104] sm:$0xf] }
  0x52   :  { %835 = vmatpush.bf16.msra.mxu0 %v1530_v28  ;;  %v1615_v28 = vld [vmem:[#allocation5 + $0x228] sm:$0xf0]  ;;  %v1910_v55 = vld [vmem:[#allocation5 + $0x204] sm:$0xf]  ;;  %v1474_v62 = vor.u32 %v1878_v52, %v1471_v53  ;;  %v1956_v53 = vld [vmem:[#allocation7 + $0x60] sm:$0xff] }
  0x53   :  { %828 = vmatpush.bf16.msra.mxu2 %v1410_v38  ;;  %815 = vmatmul.bf16.vlgmr.msrb.gmra.mxu3 %v2184_v60  ;;  %v1698_v60 = vor.u32 %v1934_v11, %v1695_v12  ;;  %v1618_v36 = vor.u32 %v1914_v27, %v1615_v28  ;;  %v1880_v38 = vld [vmem:[#allocation5 + $0x114] sm:$0xf]  ;;  %v1894_v0 = vld [vmem:[#allocation5 + $0x184] sm:$0xf]  ;;  %v1949_v11 = vld [vmem:[#allocation7 + $0x28] sm:$0xff] }
  0x54   :  { %863 = vmatpush.bf16.msra.mxu3 %v1658_v32  ;;  %787 = vmatmul.bf16.vlgmr.msrb.gmra.mxu1 %v2200_v44  ;;  %v1490_v32 = vor.u32 %v1882_v25, %v1487_v26  ;;  %v1482_v46 = vor.u32 %v1880_v38, %v1479_v39  ;;  %v1926_v3 = vld [vmem:[#allocation5 + $0x284] sm:$0xf]  ;;  %v1948_v12 = vld [vmem:[#allocation7 + $0x20] sm:$0xff]  ;;  %v1959_v27 = vld [vmem:[#allocation7 + $0x78] sm:$0xff] }
  0x55   :  { %849 = vmatpush.bf16.msra.mxu1 %v1594_v41  ;;  %v1607_v41 = vld [vmem:[#allocation5 + $0x218] sm:$0xf0]  ;;  %v1950_v10 = vld [vmem:[#allocation7 + $0x30] sm:$0xff] }
  0x56   :  { %836 = vmatpush.bf16.msra.mxu0 %v1522_v45  ;;  %829 = vmatmul.bf16.vlgmr.msra.gmra.mxu2 %v2188_v4  ;;  %v1623_v4 = vld [vmem:[#allocation5 + $0x238] sm:$0xf0]  ;;  %v1896_v45 = vld [vmem:[#allocation5 + $0x194] sm:$0xf]  ;;  %v1610_v51 = vor.u32 %v1912_v40, %v1607_v41  ;;  %v1958_v34 = vld [vmem:[#allocation7 + $0x70] sm:$0xff] }
  0x57   :  { %877 = vmatpush.bf16.msrb.mxu2 %v1722_v42  ;;  %v1626_v24 = vor.u32 %v1916_v17, %v1623_v4  ;;  %v1554_v42 = vor.u32 %v1898_v31, %v1551_v33  ;;  %v1957_v41 = vld [vmem:[#allocation7 + $0x68] sm:$0xff] }
  0x58   :  { %864 = vmatpush.bf16.msra.mxu3 %v1650_v50  ;;  %v1671_v50 = vld [vmem:[#allocation5 + $0x298] sm:$0xf0] }
  0x59   :  { %850 = vmatpush.bf16.msra.mxu1 %v1586_v56  ;;  %v1599_v56 = vld [vmem:[#allocation5 + $0x208] sm:$0xf0]  ;;  %v1674_v61 = vor.u32 %v1928_v49, %v1671_v50 }
  0x5a   :  { %837 = vmatpush.bf16.msra.mxu0 %v1514_v59  ;;  %v1546_v59 = vor.u32 %v1896_v45, %v1543_v47  ;;  %v1602_v2 = vor.u32 %v1910_v55, %v1599_v56 }
  0x5b   :  { %878 = vmatpush.bf16.msrb.mxu2 %v1714_v57  ;;  %v1942_v57 = vld [vmem:[#allocation5 + $0x304] sm:$0xf] }
  0x5c   :  { %865 = vmatpush.bf16.msra.mxu3 %v1642_v1  ;;  %v1535_v1 = vld [vmem:[#allocation5 + $0x188] sm:$0xf0]  ;;  %v1730_v6 = vor.u32 %v1942_v57, %v1727_v58 }
  0x5d   :  { %851 = vmatpush.bf16.msra.mxu1 %v1578_v8  ;;  %v1538_v7 = vor.u32 %v1894_v0, %v1535_v1  ;;  %v1666_v8 = vor.u32 %v1926_v3, %v1663_v5 }
  0x5e   :  { %838 = vmatpush.bf16.msra.mxu0 %v1506_v13  ;;  %v1947_v13 = vld [vmem:[#allocation7 + $0x18] sm:$0xff] }
  0x5f   :  { %879 = vmatpush.bf16.msrb.mxu2 %v1706_v9  ;;  %v1951_v9 = vld [vmem:[#allocation7 + $0x38] sm:$0xff] }
  0x60   :  { %866 = vmatpush.bf16.msra.mxu3 %v1634_v14  ;;  %v1945_v14 = vld [vmem:[#allocation7 + $0x8] sm:$0xff] }
  0x61   :  { %852 = vmatpush.bf16.msra.mxu1 %v1570_v18 }
  0x62   :  { %839 = vmatpush.bf16.msra.mxu0 %v1498_v20 }
  0x63   :  { %880 = vmatpush.bf16.msrb.mxu2 %v1698_v60 }
  0x64   :  { %867 = vmatpush.bf16.msra.mxu3 %v1626_v24 }
  0x65   :  { %853 = vmatpush.bf16.msra.mxu1 %v1562_v29 }
  0x66   :  { %840 = vmatpush.bf16.msra.mxu0 %v1490_v32 }
  0x67   :  { %881 = vmatpush.bf16.msrb.mxu2 %v1690_v30  ;;  %v905_v30 = vld [vmem:[%s2285_s3] sm:$0xff] }
  0x68   :  { %868 = vmatpush.bf16.msra.mxu3 %v1618_v36  ;;  %v931_v36 = vperm.slane %v905_v30, 1  ;;  %v913_v39 = vperm.slane %v905_v30, 4  ;;  %v925_v52 = vperm.slane %v905_v30, 0 }
  0x69   :  { %854 = vmatpush.bf16.msra.mxu1 %v1554_v42 }
  0x6a   :  { %841 = vmatpush.bf16.msra.mxu0 %v1482_v46 }
  0x6b   :  { %882 = vmatpush.bf16.msrb.mxu2 %v1682_v43  ;;  %v937_v43 = vperm.slane %v905_v30, 2 }
  0x6c   :  { %869 = vmatpush.bf16.msra.mxu3 %v1610_v51  ;;  %v919_v51 = vperm.slane %v905_v30, 5 }
  0x6d   :  { %855 = vmatpush.bf16.msra.mxu1 %v1546_v59  ;;  %v907_v59 = vperm.slane %v905_v30, 3 }
  0x6e   :  { %842 = vmatpush.bf16.msra.mxu0 %v1474_v62  ;;  %v1955_v62 = vld [vmem:[#allocation7 + $0x58] sm:$0xff] }
  0x6f   :  { %883 = vmatpush.bf16.msrb.mxu2 %v1674_v61 }
  0x70   :  { %870 = vmatpush.bf16.msra.mxu3 %v1602_v2 }
  0x71   :  { %856 = vmatpush.bf16.msra.mxu1 %v1538_v7  ;;  %843 = vmatmul.bf16.vlgmr.msra.gmra.mxu0 %v2182_v54  ;;  %v1946_v54 = vld [vmem:[#allocation7 + $0x10] sm:$0xff] }
  0x72   :  { %898 = vmatpush.bf16.msrb.mxu0 %v1730_v6 }
  0x73   :  { %871 = vmatmul.bf16.vlgmr.msra.gmra.mxu3 %v2198_v37  ;;  %884 = vmatpush.bf16.msrb.mxu2 %v1666_v8  ;;  %v1954_v8 = vld [vmem:[#allocation7 + $0x50] sm:$0xff] }
  0x74   :  { %857 = vmatmul.bf16.vlgmr.msra.gmra.mxu1 %v2186_v63  ;;  %v2215_v63 = vld [vmem:[%s2284_s2] sm:$0x3]  ;;  %1099 = vmatpush.bf16.msrb.mxu3 %v1959_v27 }
  0x75   :  { %1085 = vmatpush.bf16.msrb.mxu1 %v1951_v9 }
  0x76   :  { %885 = vmatmul.bf16.vlgmr.msrb.gmra.mxu2 %v2200_v44 }
  0x78   :  { %1100 = vmatpush.bf16.msrb.mxu3 %v1958_v34 }
  0x79   :  { %1086 = vmatpush.bf16.msrb.mxu1 %v1950_v10 }
  0x7c   :  { %1101 = vmatpush.bf16.msrb.mxu3 %v1957_v41 }
  0x7d   :  { %1087 = vmatpush.bf16.msrb.mxu1 %v1949_v11  ;;  %v212_v11 = vperm.slane %v2215_v63, 1 }
  0x80   :  { %1102 = vmatpush.bf16.msrb.mxu3 %v1956_v53 }
  0x81   :  { %1732 = vmatmul.msk.bf16.vlgmr.msrb.gmra.mxu0 %vm705_vm0, %v2194_v48  ;;  %1088 = vmatpush.bf16.msrb.mxu1 %v1948_v12  ;;  %v211_v48 = vperm.slane %v2215_v63, 0  ;;  %v1953_v12 = vld [vmem:[#allocation7 + $0x48] sm:$0xff] }
  0x84   :  { %1103 = vmatpush.bf16.msrb.mxu3 %v1955_v62  ;;  %v1963_v62 = vld [vmem:[%s2289_s7 + $0x18] sm:$0xff] }
  0x85   :  { %1089 = vmatpush.bf16.msrb.mxu1 %v1947_v13 }
  0x88   :  { %1104 = vmatpush.bf16.msrb.mxu3 %v1954_v8 }
  0x89   :  { %1090 = vmatpush.bf16.msrb.mxu1 %v1946_v54  ;;  %v1952_v54 = vld [vmem:[#allocation7 + $0x40] sm:$0xff] }
  0x8c   :  { %1105 = vmatpush.bf16.msrb.mxu3 %v1953_v12 }
  0x8d   :  { %1091 = vmatpush.bf16.msrb.mxu1 %v1945_v14 }
  0x90   :  { %1106 = vmatpush.bf16.msrb.mxu3 %v1952_v54 }
  0x91   :  { %1092 = vmatpush.bf16.msrb.mxu1 %v1944_v16 }
  0xae   :  { %v718_v37 = vpop.f32.mrf.mxu0 }
  0xaf   :  { %v719_v17 = vadd.f32 %v718_v37, %v211_v48 }
  0xb1   :  { %v732_v15 = vpop.f32.mrf.mxu1 }
  0xb2   :  { %v733_v4 = vadd.f32 %v732_v15, %v719_v17 }
  0xb5   :  { %v746_v44 = vpop.f32.mrf.mxu2 }
  0xb6   :  { %v720_v18 = vpop.f32.mrf.mxu0  ;;  %v760_v19 = vpop.f32.mrf.mxu3  ;;  %v747_v21 = vadd.f32 %v746_v44, %v733_v4 }
  0xb7   :  { %v721_v22 = vadd.f32 %v720_v18, %v211_v48 }
  0xb8   :  { %v761_v23 = vadd.f32 %v760_v19, %v747_v21 }
  0xb9   :  { %v734_v20 = vpop.f32.mrf.mxu1 }
  0xba   :  { %v735_v24 = vadd.f32 %v734_v20, %v721_v22 }
  0xbd   :  { %v748_v60 = vpop.f32.mrf.mxu2 }
  0xbe   :  { %v749_v31 = vadd.f32 %v748_v60, %v735_v24  ;;  %v762_v33 = vpop.f32.mrf.mxu3 }
  0xc0   :  { %v763_v38 = vadd.f32 %v762_v33, %v749_v31 }
  0xc5   :  { %v802_v26 = vpop.f32.mrf.mxu2 }
  0xcd   :  { %v804_v47 = vpop.f32.mrf.mxu2 }
  0xce   :  { %v774_v25 = vpop.f32.mrf.mxu0 }
  0xcf   :  { %v775_v28 = vadd.f32 %v774_v25, %v761_v23  ;;  %v906_v23 = vld [vmem:[%s2285_s3 + $0x8] sm:$0xff] }
  0xd0   :  { %v914_v31 = vperm.slane %v906_v23, 4  ;;  %v938_v34 = vperm.slane %v906_v23, 2 }
  0xd1   :  { %v788_v29 = vpop.f32.mrf.mxu1 }
  0xd2   :  { %v789_v32 = vadd.f32 %v788_v29, %v775_v28  ;;  %v932_v29 = vperm.slane %v906_v23, 1 }
  0xd4   :  { %v803_v35 = vadd.f32 %v802_v26, %v789_v32 }
  0xd6   :  { %v776_v40 = vpop.f32.mrf.mxu0  ;;  %v933_v42 = vmul.f32 %v931_v36, %v803_v35  ;;  %v915_v50 = vmul.f32 %v913_v39, %v803_v35  ;;  %vm927_vm1 = vcmp.le.f32.partialorder %v803_v35, %v925_v52  ;;  %v816_v3 = vpop.f32.mrf.mxu3  ;;  %vm909_vm3 = vcmp.ge.f32.partialorder %v803_v35, %v907_v59 }
  0xd7   :  { %v777_v45 = vadd.f32 %v776_v40, %v763_v38  ;;  %v817_v13 = vadd.f32 %v816_v3, %v212_v11  ;;  %v926_v40 = vperm.slane %v906_v23, 0 }
  0xd8   :  { %v939_v55 = vadd.f32 %v937_v43, %v933_v42  ;;  %v921_v61 = vadd.f32 %v919_v51, %v915_v50 }
  0xd9   :  { %v790_v46 = vpop.f32.mrf.mxu1  ;;  %v830_v9 = vpop.f32.mrf.mxu2 }
  0xda   :  { %v791_v49 = vadd.f32 %v790_v46, %v777_v45  ;;  %v943_v2 = vsel %vm927_vm1, %v939_v55, %v803_v35  ;;  %v831_v48 = vadd.f32 %v830_v9, %v817_v13  ;;  %v908_v46 = vperm.slane %v906_v23, 3 }
  0xdb   :  { %v947_v6 = vsel %vm909_vm3, %v921_v61, %v943_v2  ;;  %v1964_v61 = vld [vmem:[%s2289_s7 + $0x20] sm:$0xff]  ;;  %vm1279_vm1 = vcmask 523264  }
  0xdc   :  { %v805_v56 = vadd.f32 %v804_v47, %v791_v49  ;;  %v1960_v2 = vld [vmem:[%s2289_s7] sm:$0xff] }
  0xde   :  { %v917_v57 = vmul.f32 %v913_v39, %v805_v56  ;;  %v935_v58 = vmul.f32 %v931_v36, %v805_v56  ;;  %vm929_vm2 = vcmp.le.f32.partialorder %v805_v56, %v925_v52  ;;  %vm911_vm4 = vcmp.ge.f32.partialorder %v805_v56, %v907_v59  ;;  %v818_v37 = vpop.f32.mrf.mxu3  ;;  %v1965_v59 = vld [vmem:[%s2289_s7 + $0x28] sm:$0xff] }
  0xdf   :  { %v819_v17 = vadd.f32 %v818_v37, %v212_v11  ;;  %v920_v39 = vperm.slane %v906_v23, 5 }
  0xe0   :  { %v941_v0 = vadd.f32 %v937_v43, %v935_v58  ;;  %v923_v1 = vadd.f32 %v919_v51, %v917_v57  ;;  %v1967_v57 = vld [vmem:[%s2289_s7 + $0x38] sm:$0xff]  ;;  %v1966_v58 = vld [vmem:[%s2289_s7 + $0x30] sm:$0xff] }
  0xe1   :  { %v832_v14 = vpop.f32.mrf.mxu2  ;;  %1205 = vmatpush.bf16.msra.mxu0 %v1967_v57 }
  0xe2   :  { %v945_v5 = vsel %vm929_vm2, %v941_v0, %v805_v56  ;;  %v833_v20 = vadd.f32 %v832_v14, %v819_v17  ;;  %v1962_v0 = vld [vmem:[%s2289_s7 + $0x10] sm:$0xff] }
  0xe3   :  { %v949_v7 = vsel %vm911_vm4, %v923_v1, %v945_v5  ;;  %v1961_v1 = vld [vmem:[%s2289_s7 + $0x8] sm:$0xff]  ;;  %v1982_v5 = vld [vmem:[%s2287_s5] ss:$0 sm:$0xff] }
  0xe4   :  { %v951_v10 = vpack.c.bf16 %v949_v7, %v947_v6  ;;  %v1113_v6 = vld [vmem:[%s2288_s6] sm:$0xff] }
  0xe5   :  { %1206 = vmatpush.bf16.msra.mxu0 %v1966_v58  ;;  %v1117_v12 = vperm.slane %v1113_v6, 4  ;;  %v1129_v54 = vperm.slane %v1113_v6, 2  ;;  %v1120_v14 = vperm.slane %v1113_v6, 5 }
  0xe6   :  { %1093 = vmatmul.bf16.vlgmr.msrb.gmra.mxu1 %v951_v10  ;;  %v1126_v10 = vperm.slane %v1113_v6, 1 }
  0xe9   :  { %1207 = vmatpush.bf16.msra.mxu0 %v1965_v59  ;;  %v1984_v59 = vld [vmem:[%s2293_s11] ss:$0 sm:$0xff] }
  0xed   :  { %1208 = vmatpush.bf16.msra.mxu0 %v1964_v61 }
  0xee   :  { %v844_v44 = vpop.f32.mrf.mxu0 }
  0xef   :  { %v845_v16 = vadd.f32 %v844_v44, %v831_v48 }
  0xf1   :  { %v858_v15 = vpop.f32.mrf.mxu1  ;;  %1209 = vmatpush.bf16.msra.mxu0 %v1963_v62 }
  0xf2   :  { %v859_v60 = vadd.f32 %v858_v15, %v845_v16  ;;  %v1123_v15 = vperm.slane %v1113_v6, 0 }
  0xf5   :  { %1210 = vmatpush.bf16.msra.mxu0 %v1962_v0 }
  0xf6   :  { %v872_v4 = vpop.f32.mrf.mxu3  ;;  %v846_v18 = vpop.f32.mrf.mxu0 }
  0xf7   :  { %v873_v63 = vadd.f32 %v872_v4, %v859_v60  ;;  %v847_v21 = vadd.f32 %v846_v18, %v833_v20  ;;  %v1114_v60 = vperm.slane %v1113_v6, 3 }
  0xf9   :  { %v886_v19 = vpop.f32.mrf.mxu2  ;;  %v860_v22 = vpop.f32.mrf.mxu1  ;;  %1211 = vmatpush.bf16.msra.mxu0 %v1961_v1 }
  0xfa   :  { %v887_v24 = vadd.f32 %v886_v19, %v873_v63  ;;  %v861_v27 = vadd.f32 %v860_v22, %v847_v21 }
  0xfd   :  { %1212 = vmatpush.bf16.msra.mxu0 %v1960_v2 }
  0xfe   :  { %v874_v25 = vpop.f32.mrf.mxu3  ;;  %v900_v26 = vpop.f32.mrf.mxu0 }
  0xff   :  { %v901_v28 = vadd.f32 %v900_v26, %v887_v24  ;;  %v875_v30 = vadd.f32 %v874_v25, %v861_v27  ;;  %v1971_v26 = vld [vmem:[%s2292_s10 + $0x18] sm:$0xff]  ;;  %v1970_v27 = vld [vmem:[%s2292_s10 + $0x10] sm:$0xff] }
 0x100   :  { %1287 = vmatpush.bf16.msra.mxu2 %v1971_v26 }
 0x101   :  { %v888_v32 = vpop.f32.mrf.mxu2  ;;  %v934_v33 = vmul.f32 %v932_v29, %v901_v28  ;;  %v916_v36 = vmul.f32 %v914_v31, %v901_v28  ;;  %vm928_vm5 = vcmp.le.f32.partialorder %v901_v28, %v926_v40  ;;  %vm910_vm7 = vcmp.ge.f32.partialorder %v901_v28, %v908_v46 }
 0x102   :  { %v889_v35 = vadd.f32 %v888_v32, %v875_v30  ;;  %v1983_v30 = vld [vmem:[%s2290_s8] ss:$0 sm:$0xff] }
 0x103   :  { %v940_v41 = vadd.f32 %v938_v34, %v934_v33  ;;  %v922_v47 = vadd.f32 %v920_v39, %v916_v36 }
 0x104   :  { %1288 = vmatpush.bf16.msra.mxu2 %v1970_v27 }
 0x105   :  { %v944_v51 = vsel %vm928_vm5, %v940_v41, %v901_v28  ;;  %v1969_v28 = vld [vmem:[%s2292_s10 + $0x8] sm:$0xff] }
 0x106   :  { %v902_v38 = vpop.f32.mrf.mxu0  ;;  %v948_v53 = vsel %vm910_vm7, %v922_v47, %v944_v51 }
 0x107   :  { %v903_v42 = vadd.f32 %v902_v38, %v889_v35 }
 0x108   :  { %1289 = vmatpush.bf16.msra.mxu2 %v1969_v28 }
 0x109   :  { %v918_v43 = vmul.f32 %v914_v31, %v903_v42  ;;  %v936_v45 = vmul.f32 %v932_v29, %v903_v42  ;;  %vm930_vm6 = vcmp.le.f32.partialorder %v903_v42, %v926_v40  ;;  %vm912_vm8 = vcmp.ge.f32.partialorder %v903_v42, %v908_v46  ;;  %v1968_v29 = vld [vmem:[%s2292_s10] sm:$0xff]  ;;  %s2104_s10 = smov [#allocation8]  }
 0x10a   :  { %v1219_v31 = vld [vmem:[%s2291_s9] sm:$0xff]  ;;  %s1323_s11 = sshll.u32 %s2104_s10, 4  ;;  %s1324_s11 = int_to_ptr.vmem [resolvable:$true] %s1323_s11 }
 0x10b   :  { %v942_v49 = vadd.f32 %v938_v34, %v936_v45  ;;  %v924_v50 = vadd.f32 %v920_v39, %v918_v43  ;;  %v1232_v34 = vperm.slane %v1219_v31, 1  ;;  %v1223_v35 = vperm.slane %v1219_v31, 4 }
 0x10c   :  { %1290 = vmatpush.bf16.msra.mxu2 %v1968_v29  ;;  %v1235_v38 = vperm.slane %v1219_v31, 2  ;;  %v1226_v40 = vperm.slane %v1219_v31, 5  ;;  %v1229_v41 = vperm.slane %v1219_v31, 0  ;;  %v1220_v46 = vperm.slane %v1219_v31, 3 }
 0x10d   :  { %v946_v52 = vsel %vm930_vm6, %v942_v49, %v903_v42 }
 0x10e   :  { %v950_v55 = vsel %vm912_vm8, %v924_v50, %v946_v52 }
 0x10f   :  { %v952_v56 = vpack.c.bf16 %v950_v55, %v948_v53 }
 0x111   :  { %1107 = vmatmul.bf16.vlgmr.msrb.gmra.mxu3 %v952_v56 }
 0x163   :  { %v1094_v3 = vpop.f32.mrf.mxu1 }
 0x164   :  { %v1095_v7 = vadd.f32 %v1982_v5, %v1094_v3 }
 0x16b   :  { %v1096_v11 = vpop.f32.mrf.mxu1 }
 0x16c   :  { %v1097_v37 = vadd.f32 %v1982_v5, %v1096_v11 }
 0x194   :  { %v1108_v8 = vpop.f32.mrf.mxu3 }
 0x195   :  { %v1109_v9 = vadd.f32 %v1108_v8, %v1095_v7 }
 0x197   :  { %v1127_v13 = vmul.f32 %v1126_v10, %v1109_v9  ;;  %v1118_v44 = vmul.f32 %v1117_v12, %v1109_v9  ;;  %vm1124_vm9 = vcmp.le.f32.partialorder %v1109_v9, %v1123_v15  ;;  %vm1115_vm11 = vcmp.ge.f32.partialorder %v1109_v9, %v1114_v60 }
 0x199   :  { %v1130_v16 = vadd.f32 %v1129_v54, %v1127_v13  ;;  %v1121_v19 = vadd.f32 %v1120_v14, %v1118_v44 }
 0x19b   :  { %v1132_v21 = vsel %vm1124_vm9, %v1130_v16, %v1109_v9 }
 0x19c   :  { %v1110_v48 = vpop.f32.mrf.mxu3  ;;  %v1134_v23 = vsel %vm1115_vm11, %v1121_v19, %v1132_v21 }
 0x19d   :  { %v1111_v17 = vadd.f32 %v1110_v48, %v1097_v37 }
 0x19f   :  { %v1119_v4 = vmul.f32 %v1117_v12, %v1111_v17  ;;  %v1128_v18 = vmul.f32 %v1126_v10, %v1111_v17  ;;  %vm1125_vm10 = vcmp.le.f32.partialorder %v1111_v17, %v1123_v15  ;;  %vm1116_vm12 = vcmp.ge.f32.partialorder %v1111_v17, %v1114_v60 }
 0x1a1   :  { %v1131_v20 = vadd.f32 %v1129_v54, %v1128_v18  ;;  %v1122_v63 = vadd.f32 %v1120_v14, %v1119_v4 }
 0x1a3   :  { %v1133_v22 = vsel %vm1125_vm10, %v1131_v20, %v1111_v17 }
 0x1a4   :  { %v1135_v24 = vsel %vm1116_vm12, %v1122_v63, %v1133_v22 }
 0x1a5   :  { %v1136_v25 = vpack.c.bf16 %v1135_v24, %v1134_v23 }
 0x1a7   :  { %1213 = vmatmul.bf16.vlgmr.msra.gmra.mxu0 %v1136_v25 }
 0x224   :  { %v1214_v32 = vpop.f32.mrf.mxu0 }
 0x225   :  { %v1215_v33 = vadd.f32 %v1983_v30, %v1214_v32 }
 0x227   :  { %v1233_v36 = vmul.f32 %v1232_v34, %v1215_v33  ;;  %v1224_v39 = vmul.f32 %v1223_v35, %v1215_v33  ;;  %vm1230_vm13 = vcmp.le.f32.partialorder %v1215_v33, %v1229_v41  ;;  %vm1221_vm15 = vcmp.ge.f32.partialorder %v1215_v33, %v1220_v46 }
 0x229   :  { %v1236_v43 = vadd.f32 %v1235_v38, %v1233_v36  ;;  %v1227_v50 = vadd.f32 %v1226_v40, %v1224_v39 }
 0x22b   :  { %v1238_v51 = vsel %vm1230_vm13, %v1236_v43, %v1215_v33 }
 0x22c   :  { %v1216_v42 = vpop.f32.mrf.mxu0  ;;  %v1240_v56 = vsel %vm1221_vm15, %v1227_v50, %v1238_v51 }
 0x22d   :  { %v1217_v45 = vadd.f32 %v1983_v30, %v1216_v42 }
 0x22f   :  { %v1225_v47 = vmul.f32 %v1223_v35, %v1217_v45  ;;  %v1234_v49 = vmul.f32 %v1232_v34, %v1217_v45  ;;  %vm1231_vm14 = vcmp.le.f32.partialorder %v1217_v45, %v1229_v41  ;;  %vm1222_vm0 = vcmp.ge.f32.partialorder %v1217_v45, %v1220_v46 }
 0x231   :  { %v1228_v52 = vadd.f32 %v1226_v40, %v1225_v47  ;;  %v1237_v53 = vadd.f32 %v1235_v38, %v1234_v49 }
 0x233   :  { %v1239_v55 = vsel %vm1231_vm14, %v1237_v53, %v1217_v45 }
 0x234   :  { %v1241_v57 = vsel %vm1222_vm0, %v1228_v52, %v1239_v55 }
 0x235   :  { %v1242_v58 = vpack.c.bf16 %v1241_v57, %v1240_v56 }
 0x237   :  { %1845 = vmatmul.msk.bf16.vlgmr.msra.gmra.mxu2 %vm1279_vm1, %v1242_v58 }
 0x2ba   :  { %v1292_v61 = vpop.f32.mrf.mxu2 }
 0x2bb   :  { %v1293_v62 = vadd.f32 %v1984_v59, %v1292_v61 }
 0x2bd   :  { %1297 = vmax.xlane.f32.xlu0 %v1293_v62 }
 0x2c2   :  { %v1294_v0 = vpop.f32.mrf.mxu2 }
 0x2c3   :  { %v1295_v1 = vadd.f32 %v1984_v59, %v1294_v0 }
 0x2c5   :  { %1299 = vmax.xlane.f32.xlu0 %v1295_v1 }
 0x330   :  { %v1298_v2 = vpop.xlane.xlu0 %1297 }
 0x331   :  { %v1301_v3 = vsub.f32 %v1293_v62, %v1298_v2 }
 0x333   :  { %v1303_v5 = vmul.f32 1.442695, %v1301_v3 }
 0x335   :  { %1985 = vpow2.f32 %v1303_v5 }
 0x338   :  { %v1300_v6 = vpop.xlane.xlu0 %1299 }
 0x339   :  { %v1302_v7 = vsub.f32 %v1295_v1, %v1300_v6 }
 0x33b   :  { %v1986_v8 = vpop.eup %1985  ;;  %v1305_v9 = vmul.f32 1.442695, %v1302_v7 }
 0x33c   :  { %1307 = vadd.xlane.f32.xlu1 %v1986_v8 }
 0x33d   :  { %1987 = vpow2.f32 %v1305_v9 }
 0x343   :  { %v1988_v10 = vpop.eup %1987 }
 0x344   :  { %1309 = vadd.xlane.f32.xlu1 %v1988_v10 }
 0x3af   :  { %v1308_v11 = vpop.xlane.xlu1 %1307 }
 0x3b0   :  { %1989 = vlog2.f32 %v1308_v11 }
 0x3b6   :  { %v1990_v12 = vpop.eup %1989 }
 0x3b7   :  { %v1312_v13 = vmul.f32 0.6931472, %v1990_v12  ;;  %v1310_v54 = vpop.xlane.xlu1 %1309 }
 0x3b8   :  { %1991 = vlog2.f32 %v1310_v54 }
 0x3b9   :  { %v1315_v37 = vsub.f32 %v1301_v3, %v1312_v13 }
 0x3bb   :  { %1317 = vst [vmem:[#allocation8] sm:$0xff] %v1315_v37 }
 0x3be   :  { %v1992_v44 = vpop.eup %1991 }
 0x3bf   :  { %v1314_v48 = vmul.f32 0.6931472, %v1992_v44 }
 0x3c1   :  { %v1316_v14 = vsub.f32 %v1302_v7, %v1314_v48 }
 0x3c3   :  { %1318 = vst [vmem:[#allocation8 + $0x8] sm:$0xff] %v1316_v14 }
 0x3c4   :  { %1331 = dma.vmem_to_hbm [thread:$0]  %s1324_s11, 256, %s1326_s18, [#allocation4], %s2096_s29, %s2096_s29, %s2097_s30  }
 0x3c5   :  { %2093 = dma.done.wait [#allocation4], 256  }
 0x3c6   :  { %2094 = vsyncadd [#allocation4], 4294967040 }
 0x3c7   :  { %1336 = vsyncpa [#allocation3], 1 }
 0x3c8   :  { %1337 = vsyncpa [#allocation6], 1 }
 0x3c9   :  { %1338 = vsyncpa [#allocation4], 1 }

</bundles_post_ra>
